<compile_context>
chip_gen: v7x
topology: tpu7x:2x2x1
jax: 0.10.0
libtpu: 0.0.40
codegen_flags: <defaults>
</compile_context>

<pallas_src>
import jax
import jax.numpy as jnp
from jax import lax
from jax.experimental import pallas as pl
from jax.experimental.pallas import tpu as pltpu


def _eye(n):
    r = lax.broadcasted_iota(jnp.int32, (n, n), 0)
    c = lax.broadcasted_iota(jnp.int32, (n, n), 1)
    return (r == c).astype(jnp.float32)


def gpr_kernel(params_ref, x_ref, xs_ref, cm_col_ref, cm_row_ref, tm_row_ref,
               y_ref, out_ref):
    """Fused GPR forward for the whole batch in one program.

    Stages (all resident in VMEM / vregs, nothing written back in between):
      1. masked covariances Sigma (B,N,N), Sigma_str (B,N,M) via the Gram
         identity ||a-b||^2 = |a|^2 + |b|^2 - 2 a.b (batched MXU matmuls,
         f32 accumulate, self-distance diagonal exactly zero);
      2. Sigma^{-1} [Sigma_str | y] via an unrolled Gauss-Jordan elimination
         (N rank-1 VPU updates, no pivoting -- Sigma is SPD here);
      3. mu = Ss^T (Sigma^{-1} y),
         var = ReLU(sf^2 t^2 + sy^2 - diag(Ss^T Sigma^{-1} Ss)).
    Output is one lane-concatenated slab (B, 1, 2M) = [mu | var].
    """
    l = params_ref[0]
    sf = params_ref[1]
    sy = params_ref[2]
    sf2 = sf * sf
    sy2 = sy * sy
    half_inv_l2 = 0.5 / (l * l)

    x = x_ref[...]            # (B, N, D)  raw training inputs
    xs = xs_ref[...]          # (B, M, D)  raw test inputs
    cm_col = cm_col_ref[...]  # (B, N, 1)
    cm_row = cm_row_ref[...]  # (B, 1, N)
    tm_row = tm_row_ref[...]  # (B, 1, M)
    yc = y_ref[...]           # (B, N, 1)

    _, n, _ = x.shape
    m = xs.shape[1]
    eye_n2 = _eye(n)          # (N, N) -- also reused for the GJ one-hot columns
    eye_n = eye_n2[None]      # (1, N, N)
    eye_m = _eye(m)[None]     # (1, M, M)

    # ---- stage 1: covariances (MXU) --------------------------------------
    dn = (((2,), (2,)), ((0,), (0,)))   # contract feature axis, batch over B
    g_xx = lax.dot_general(x, x, dn, preferred_element_type=jnp.float32)    # (B,N,N)
    g_xs = lax.dot_general(x, xs, dn, preferred_element_type=jnp.float32)   # (B,N,M)
    g_ss = lax.dot_general(xs, xs, dn, preferred_element_type=jnp.float32)  # (B,M,M)

    # Squared norms read off the Gram diagonals -> diag(sq_xx) is exactly 0.
    gd = g_xx * eye_n
    nx_col = jnp.sum(gd, axis=-1, keepdims=True)               # (B,N,1)
    nx_row = jnp.sum(gd, axis=-2, keepdims=True)               # (B,1,N)
    nxs_row = jnp.sum(g_ss * eye_m, axis=-2, keepdims=True)    # (B,1,M)

    sq_xx = jnp.maximum(nx_col + nx_row - 2.0 * g_xx, 0.0)
    sq_xs = jnp.maximum(nx_col + nxs_row - 2.0 * g_xs, 0.0)

    k_xx = sf2 * jnp.exp(-jnp.sqrt(sq_xx) * half_inv_l2)
    k_xs = sf2 * jnp.exp(-jnp.sqrt(sq_xs) * half_inv_l2)

    # Sigma = (K(X,X) + sy^2 I) * (c c^T) + I * (1 - c c^T)
    mask_cc = cm_col * cm_row
    sigma = (k_xx + sy2 * eye_n) * mask_cc + eye_n * (1.0 - mask_cc)   # (B,N,N)
    # Sigma_str = K(X, X*) * (c t^T)
    ss = k_xs * (cm_col * tm_row)                                      # (B,N,M)

    # ---- stage 2: Sigma^{-1} [Sigma_str | y] via unrolled Gauss-Jordan ----
    # TODO(synk): no partial pivoting (torch.inverse's pivoted LU has no clean
    # Pallas equivalent); valid here because Sigma is SPD with positive pivots.
    a = sigma
    rs = ss
    ry = yc
    for k in range(n):
        piv = a[:, k:k + 1, k:k + 1]                           # (B,1,1)
        inv = 1.0 / piv
        # `factor` carries (pivot - 1) at row k so ONE rank-1 update both
        # eliminates every other row and rescales row k to the pivot row / piv.
        factor = a[:, :, k:k + 1] - eye_n2[:, k:k + 1][None]   # (B,N,1)
        a = a - factor * (a[:, k:k + 1, :] * inv)
        rs = rs - factor * (rs[:, k:k + 1, :] * inv)
        ry = ry - factor * (ry[:, k:k + 1, :] * inv)
    sis = rs   # Sigma^{-1} Sigma_str   (B,N,M)
    siy = ry   # Sigma^{-1} y           (B,N,1)

    # ---- stage 3: mu and diag(Sigma_pred) ---------------------------------
    mu = jnp.sum(ss * siy, axis=-2, keepdims=True)       # (B,1,M)
    quad = jnp.sum(ss * sis, axis=-2, keepdims=True)     # (B,1,M)
    var = jnp.maximum(sf2 * tm_row * tm_row + sy2 - quad, 0.0)

    out_ref[...] = jnp.concatenate([mu, var], axis=-1)   # (B,1,2M), single store


def gpr_forward(params, X, y, c_m, X_str, t_m):
    B, N, D = X.shape
    M = X_str.shape[1]
    f32 = jnp.float32

    c_m = c_m.astype(f32)
    t_m = t_m.astype(f32)
    cm_col = c_m[:, :, None]          # (B, N, 1)
    cm_row = c_m[:, None, :]          # (B, 1, N)
    tm_row = t_m[:, None, :]          # (B, 1, M)
    y_col = y.astype(f32)[:, :, None]  # (B, N, 1)

    vmem = pl.BlockSpec(memory_space=pltpu.MemorySpace.VMEM)
    smem = pl.BlockSpec(memory_space=pltpu.MemorySpace.SMEM)

    out = pl.pallas_call(
        gpr_kernel,
        out_shape=jax.ShapeDtypeStruct((B, 1, 2 * M), f32),
        in_specs=[smem, vmem, vmem, vmem, vmem, vmem, vmem],
        out_specs=vmem,
    )(params.astype(f32), X.astype(f32), X_str.astype(f32),
      cm_col, cm_row, tm_row, y_col)

    # split the lane-concatenated slab into the module's (B, M, 1) layout
    mu = out[:, 0, :M][:, :, None]
    var = out[:, 0, M:][:, :, None]
    return mu, var


def gpr_reference(params, X, y, c_m, X_str, t_m):
    """Pure-JAX port of the PyTorch forward (mu/mu_str/temp_mean are dead code)."""
    l, sf, sy = params[0], params[1], params[2]

    def cov(a, b):
        d = jnp.sqrt(jnp.sum((a[:, :, None, :] - b[:, None, :, :]) ** 2, axis=-1))
        return sf ** 2 * jnp.exp(-d / (2.0 * l ** 2))

    Xm = X * c_m[:, :, None]
    Xsm = X_str * t_m[:, :, None]
    N = X.shape[1]
    M = X_str.shape[1]
    eye_n = jnp.eye(N, dtype=jnp.float32)[None]
    eye_m = jnp.eye(M, dtype=jnp.float32)[None]

    mask_cc = c_m[:, :, None] * c_m[:, None, :]
    Sigma = (cov(Xm, Xm) + sy ** 2 * eye_n) * mask_cc + eye_n * (1.0 - mask_cc)
    Sigma_str = cov(Xm, Xsm) * (c_m[:, :, None] * t_m[:, None, :])
    Sss = cov(Xsm, Xsm) * (t_m[:, :, None] * t_m[:, None, :])

    Sinv = jnp.linalg.inv(Sigma)
    mu_pred = jnp.matmul(jnp.swapaxes(Sigma_str, -1, -2),
                         jnp.matmul(Sinv, y[:, :, None]))
    Sp = Sss + eye_m * sy ** 2 - jnp.matmul(jnp.swapaxes(Sigma_str, -1, -2),
                                            jnp.matmul(Sinv, Sigma_str))
    Sp = jnp.maximum(Sp, 0.0)
    return mu_pred, jnp.diagonal(Sp, axis1=-2, axis2=-1)[:, :, None]


if __name__ == "__main__":
    key = jax.random.PRNGKey(0)
    kp, kx, ky, kxs, kc, kt = jax.random.split(key, 6)

    B, N, M, D = 2, 8, 8, 4

    # l, sigma_f, sigma_y ~ N(0, 1), matching nn.Parameter(torch.randn(1)) x3
    params = jax.random.normal(kp, (3,), dtype=jnp.float32)

    X = jax.random.normal(kx, (B, N, D), dtype=jnp.float32)
    y = jax.random.normal(ky, (B, N), dtype=jnp.float32)
    X_str = jax.random.normal(kxs, (B, M, D), dtype=jnp.float32)
    c_m = (jax.random.uniform(kc, (B, N)) > 0.3).astype(jnp.float32)
    t_m = (jax.random.uniform(kt, (B, M)) > 0.3).astype(jnp.float32)

    mu_pred, var_pred = jax.jit(gpr_forward)(params, X, y, c_m, X_str, t_m)
    jax.block_until_ready((mu_pred, var_pred))

    mu_ref, var_ref = gpr_reference(params, X, y, c_m, X_str, t_m)
    assert mu_pred.shape == (B, M, 1) and var_pred.shape == (B, M, 1)
    assert bool(jnp.all(jnp.isfinite(mu_pred))) and bool(jnp.all(jnp.isfinite(var_pred)))
    assert bool(jnp.allclose(mu_pred, mu_ref, rtol=1e-2, atol=1e-2))
    assert bool(jnp.allclose(var_pred, var_ref, rtol=1e-2, atol=1e-2))

    print("KERNEL_OK")
</pallas_src>

<mosaic_0001>
module attributes {stable_mosaic.version = 11 : i64} {
  func.func @gpr_kernel(%arg0: memref<3xf32, #tpu.memory_space<smem>>, %arg1: memref<2x8x4xf32, #tpu.memory_space<vmem>>, %arg2: memref<2x8x4xf32, #tpu.memory_space<vmem>>, %arg3: memref<2x8x1xf32, #tpu.memory_space<vmem>>, %arg4: memref<2x1x8xf32, #tpu.memory_space<vmem>>, %arg5: memref<2x1x8xf32, #tpu.memory_space<vmem>>, %arg6: memref<2x8x1xf32, #tpu.memory_space<vmem>>, %arg7: memref<2x1x16xf32, #tpu.memory_space<vmem>>) attributes {dimension_semantics = [], scalar_prefetch = 0 : i64, scratch_operands = 0 : i64, tpu.core_type = #tpu.core_type<tc>} {
    %c0 = arith.constant 0 : index
    %0 = memref.load %arg0[%c0] : memref<3xf32, #tpu.memory_space<smem>>
    %c1 = arith.constant 1 : index
    %1 = memref.load %arg0[%c1] : memref<3xf32, #tpu.memory_space<smem>>
    %c2 = arith.constant 2 : index
    %2 = memref.load %arg0[%c2] : memref<3xf32, #tpu.memory_space<smem>>
    %3 = arith.mulf %1, %1 : f32
    %4 = arith.mulf %2, %2 : f32
    %5 = arith.mulf %0, %0 : f32
    %cst = arith.constant 5.000000e-01 : f32
    %6 = arith.divf %cst, %5 : f32
    %c0_0 = arith.constant 0 : index
    %c0_1 = arith.constant 0 : index
    %c0_2 = arith.constant 0 : index
    %7 = vector.load %arg1[%c0_0, %c0_1, %c0_2] : memref<2x8x4xf32, #tpu.memory_space<vmem>>, vector<2x8x4xf32>
    %c0_3 = arith.constant 0 : index
    %c0_4 = arith.constant 0 : index
    %c0_5 = arith.constant 0 : index
    %8 = vector.load %arg2[%c0_3, %c0_4, %c0_5] : memref<2x8x4xf32, #tpu.memory_space<vmem>>, vector<2x8x4xf32>
    %c0_6 = arith.constant 0 : index
    %c0_7 = arith.constant 0 : index
    %c0_8 = arith.constant 0 : index
    %9 = vector.load %arg3[%c0_6, %c0_7, %c0_8] : memref<2x8x1xf32, #tpu.memory_space<vmem>>, vector<2x8x1xf32>
    %c0_9 = arith.constant 0 : index
    %c0_10 = arith.constant 0 : index
    %c0_11 = arith.constant 0 : index
    %10 = vector.load %arg4[%c0_9, %c0_10, %c0_11] : memref<2x1x8xf32, #tpu.memory_space<vmem>>, vector<2x1x8xf32>
    %c0_12 = arith.constant 0 : index
    %c0_13 = arith.constant 0 : index
    %c0_14 = arith.constant 0 : index
    %11 = vector.load %arg5[%c0_12, %c0_13, %c0_14] : memref<2x1x8xf32, #tpu.memory_space<vmem>>, vector<2x1x8xf32>
    %c0_15 = arith.constant 0 : index
    %c0_16 = arith.constant 0 : index
    %c0_17 = arith.constant 0 : index
    %12 = vector.load %arg6[%c0_15, %c0_16, %c0_17] : memref<2x8x1xf32, #tpu.memory_space<vmem>>, vector<2x8x1xf32>
    %13 = tpu.iota {dimensions = array<i32: 0>} : vector<8x8xi32>
    %14 = tpu.iota {dimensions = array<i32: 1>} : vector<8x8xi32>
    %15 = arith.cmpi eq, %13, %14 : vector<8x8xi32>
    %16 = arith.extui %15 : vector<8x8xi1> to vector<8x8xi32>
    %17 = arith.sitofp %16 : vector<8x8xi32> to vector<8x8xf32>
    %18 = vector.shape_cast %17 : vector<8x8xf32> to vector<1x8x8xf32>
    %19 = tpu.iota {dimensions = array<i32: 0>} : vector<8x8xi32>
    %20 = tpu.iota {dimensions = array<i32: 1>} : vector<8x8xi32>
    %21 = arith.cmpi eq, %19, %20 : vector<8x8xi32>
    %22 = arith.extui %21 : vector<8x8xi1> to vector<8x8xi32>
    %23 = arith.sitofp %22 : vector<8x8xi32> to vector<8x8xf32>
    %24 = vector.shape_cast %23 : vector<8x8xf32> to vector<1x8x8xf32>
    %cst_18 = arith.constant dense<0.000000e+00> : vector<2x8x8xf32>
    %25 = tpu.matmul %7, %7, %cst_18 {dimension_numbers = #tpu.dot_dimension_numbers<[2], [2], [1], [1], [0, 0, 0, 1, 1, 1], [0], [0]>} : vector<2x8x4xf32>, vector<2x8x4xf32>, vector<2x8x8xf32> -> vector<2x8x8xf32>
    %cst_19 = arith.constant dense<0.000000e+00> : vector<2x8x8xf32>
    %26 = tpu.matmul %7, %8, %cst_19 {dimension_numbers = #tpu.dot_dimension_numbers<[2], [2], [1], [1], [0, 0, 0, 1, 1, 1], [0], [0]>} : vector<2x8x4xf32>, vector<2x8x4xf32>, vector<2x8x8xf32> -> vector<2x8x8xf32>
    %cst_20 = arith.constant dense<0.000000e+00> : vector<2x8x8xf32>
    %27 = tpu.matmul %8, %8, %cst_20 {dimension_numbers = #tpu.dot_dimension_numbers<[2], [2], [1], [1], [0, 0, 0, 1, 1, 1], [0], [0]>} : vector<2x8x4xf32>, vector<2x8x4xf32>, vector<2x8x8xf32> -> vector<2x8x8xf32>
    %28 = vector.broadcast %18 : vector<1x8x8xf32> to vector<2x8x8xf32>
    %29 = arith.mulf %25, %28 : vector<2x8x8xf32>
    %cst_21 = arith.constant dense<0.000000e+00> : vector<2x8xf32>
    %30 = vector.multi_reduction <add>, %29, %cst_21 [2] : vector<2x8x8xf32> to vector<2x8xf32>
    %31 = vector.shape_cast %30 : vector<2x8xf32> to vector<2x8x1xf32>
    %cst_22 = arith.constant dense<0.000000e+00> : vector<2x8xf32>
    %32 = vector.multi_reduction <add>, %29, %cst_22 [1] : vector<2x8x8xf32> to vector<2x8xf32>
    %33 = vector.shape_cast %32 : vector<2x8xf32> to vector<2x1x8xf32>
    %34 = vector.broadcast %24 : vector<1x8x8xf32> to vector<2x8x8xf32>
    %35 = arith.mulf %27, %34 : vector<2x8x8xf32>
    %cst_23 = arith.constant dense<0.000000e+00> : vector<2x8xf32>
    %36 = vector.multi_reduction <add>, %35, %cst_23 [1] : vector<2x8x8xf32> to vector<2x8xf32>
    %37 = vector.shape_cast %36 : vector<2x8xf32> to vector<2x1x8xf32>
    %38 = vector.broadcast %31 : vector<2x8x1xf32> to vector<2x8x8xf32>
    %39 = vector.broadcast %33 : vector<2x1x8xf32> to vector<2x8x8xf32>
    %40 = arith.addf %38, %39 : vector<2x8x8xf32>
    %cst_24 = arith.constant 2.000000e+00 : f32
    %41 = vector.broadcast %cst_24 : f32 to vector<2x8x8xf32>
    %42 = arith.mulf %41, %25 : vector<2x8x8xf32>
    %43 = arith.subf %40, %42 : vector<2x8x8xf32>
    %cst_25 = arith.constant 0.000000e+00 : f32
    %44 = vector.broadcast %cst_25 : f32 to vector<2x8x8xf32>
    %45 = arith.maximumf %43, %44 : vector<2x8x8xf32>
    %46 = vector.broadcast %31 : vector<2x8x1xf32> to vector<2x8x8xf32>
    %47 = vector.broadcast %37 : vector<2x1x8xf32> to vector<2x8x8xf32>
    %48 = arith.addf %46, %47 : vector<2x8x8xf32>
    %cst_26 = arith.constant 2.000000e+00 : f32
    %49 = vector.broadcast %cst_26 : f32 to vector<2x8x8xf32>
    %50 = arith.mulf %49, %26 : vector<2x8x8xf32>
    %51 = arith.subf %48, %50 : vector<2x8x8xf32>
    %cst_27 = arith.constant 0.000000e+00 : f32
    %52 = vector.broadcast %cst_27 : f32 to vector<2x8x8xf32>
    %53 = arith.maximumf %51, %52 : vector<2x8x8xf32>
    %54 = math.sqrt %45 : vector<2x8x8xf32>
    %cst_28 = arith.constant 0.000000e+00 : f32
    %55 = vector.broadcast %cst_28 : f32 to vector<2x8x8xf32>
    %56 = arith.subf %55, %54 : vector<2x8x8xf32>
    %57 = vector.broadcast %6 : f32 to vector<2x8x8xf32>
    %58 = arith.mulf %56, %57 : vector<2x8x8xf32>
    %59 = math.exp %58 : vector<2x8x8xf32>
    %60 = vector.broadcast %3 : f32 to vector<2x8x8xf32>
    %61 = arith.mulf %60, %59 : vector<2x8x8xf32>
    %62 = math.sqrt %53 : vector<2x8x8xf32>
    %cst_29 = arith.constant 0.000000e+00 : f32
    %63 = vector.broadcast %cst_29 : f32 to vector<2x8x8xf32>
    %64 = arith.subf %63, %62 : vector<2x8x8xf32>
    %65 = vector.broadcast %6 : f32 to vector<2x8x8xf32>
    %66 = arith.mulf %64, %65 : vector<2x8x8xf32>
    %67 = math.exp %66 : vector<2x8x8xf32>
    %68 = vector.broadcast %3 : f32 to vector<2x8x8xf32>
    %69 = arith.mulf %68, %67 : vector<2x8x8xf32>
    %70 = vector.broadcast %9 : vector<2x8x1xf32> to vector<2x8x8xf32>
    %71 = vector.broadcast %10 : vector<2x1x8xf32> to vector<2x8x8xf32>
    %72 = arith.mulf %70, %71 : vector<2x8x8xf32>
    %73 = vector.broadcast %4 : f32 to vector<1x8x8xf32>
    %74 = arith.mulf %73, %18 : vector<1x8x8xf32>
    %75 = vector.broadcast %74 : vector<1x8x8xf32> to vector<2x8x8xf32>
    %76 = arith.addf %61, %75 : vector<2x8x8xf32>
    %77 = arith.mulf %76, %72 : vector<2x8x8xf32>
    %cst_30 = arith.constant 1.000000e+00 : f32
    %78 = vector.broadcast %cst_30 : f32 to vector<2x8x8xf32>
    %79 = arith.subf %78, %72 : vector<2x8x8xf32>
    %80 = vector.broadcast %18 : vector<1x8x8xf32> to vector<2x8x8xf32>
    %81 = arith.mulf %80, %79 : vector<2x8x8xf32>
    %82 = arith.addf %77, %81 : vector<2x8x8xf32>
    %83 = vector.broadcast %9 : vector<2x8x1xf32> to vector<2x8x8xf32>
    %84 = vector.broadcast %11 : vector<2x1x8xf32> to vector<2x8x8xf32>
    %85 = arith.mulf %83, %84 : vector<2x8x8xf32>
    %86 = arith.mulf %69, %85 : vector<2x8x8xf32>
    %87 = vector.extract_strided_slice %82 {offsets = [0, 0, 0], sizes = [2, 1, 1], strides = [1, 1, 1]} : vector<2x8x8xf32> to vector<2x1x1xf32>
    %cst_31 = arith.constant 1.000000e+00 : f32
    %88 = vector.broadcast %cst_31 : f32 to vector<2x1x1xf32>
    %89 = arith.divf %88, %87 : vector<2x1x1xf32>
    %90 = vector.extract_strided_slice %82 {offsets = [0, 0, 0], sizes = [2, 8, 1], strides = [1, 1, 1]} : vector<2x8x8xf32> to vector<2x8x1xf32>
    %91 = vector.extract_strided_slice %17 {offsets = [0, 0], sizes = [8, 1], strides = [1, 1]} : vector<8x8xf32> to vector<8x1xf32>
    %92 = vector.shape_cast %91 : vector<8x1xf32> to vector<1x8x1xf32>
    %93 = vector.broadcast %92 : vector<1x8x1xf32> to vector<2x8x1xf32>
    %94 = arith.subf %90, %93 : vector<2x8x1xf32>
    %95 = vector.extract_strided_slice %82 {offsets = [0, 0, 0], sizes = [2, 1, 8], strides = [1, 1, 1]} : vector<2x8x8xf32> to vector<2x1x8xf32>
    %96 = vector.broadcast %89 : vector<2x1x1xf32> to vector<2x1x8xf32>
    %97 = arith.mulf %95, %96 : vector<2x1x8xf32>
    %98 = vector.broadcast %94 : vector<2x8x1xf32> to vector<2x8x8xf32>
    %99 = vector.broadcast %97 : vector<2x1x8xf32> to vector<2x8x8xf32>
    %100 = arith.mulf %98, %99 : vector<2x8x8xf32>
    %101 = arith.subf %82, %100 : vector<2x8x8xf32>
    %102 = vector.extract_strided_slice %86 {offsets = [0, 0, 0], sizes = [2, 1, 8], strides = [1, 1, 1]} : vector<2x8x8xf32> to vector<2x1x8xf32>
    %103 = vector.broadcast %89 : vector<2x1x1xf32> to vector<2x1x8xf32>
    %104 = arith.mulf %102, %103 : vector<2x1x8xf32>
    %105 = vector.broadcast %94 : vector<2x8x1xf32> to vector<2x8x8xf32>
    %106 = vector.broadcast %104 : vector<2x1x8xf32> to vector<2x8x8xf32>
    %107 = arith.mulf %105, %106 : vector<2x8x8xf32>
    %108 = arith.subf %86, %107 : vector<2x8x8xf32>
    %109 = vector.extract_strided_slice %12 {offsets = [0, 0, 0], sizes = [2, 1, 1], strides = [1, 1, 1]} : vector<2x8x1xf32> to vector<2x1x1xf32>
    %110 = arith.mulf %109, %89 : vector<2x1x1xf32>
    %111 = vector.broadcast %110 : vector<2x1x1xf32> to vector<2x8x1xf32>
    %112 = arith.mulf %94, %111 : vector<2x8x1xf32>
    %113 = arith.subf %12, %112 : vector<2x8x1xf32>
    %114 = vector.extract_strided_slice %101 {offsets = [0, 1, 1], sizes = [2, 1, 1], strides = [1, 1, 1]} : vector<2x8x8xf32> to vector<2x1x1xf32>
    %cst_32 = arith.constant 1.000000e+00 : f32
    %115 = vector.broadcast %cst_32 : f32 to vector<2x1x1xf32>
    %116 = arith.divf %115, %114 : vector<2x1x1xf32>
    %117 = vector.extract_strided_slice %101 {offsets = [0, 0, 1], sizes = [2, 8, 1], strides = [1, 1, 1]} : vector<2x8x8xf32> to vector<2x8x1xf32>
    %118 = vector.extract_strided_slice %17 {offsets = [0, 1], sizes = [8, 1], strides = [1, 1]} : vector<8x8xf32> to vector<8x1xf32>
    %119 = vector.shape_cast %118 : vector<8x1xf32> to vector<1x8x1xf32>
    %120 = vector.broadcast %119 : vector<1x8x1xf32> to vector<2x8x1xf32>
    %121 = arith.subf %117, %120 : vector<2x8x1xf32>
    %122 = vector.extract_strided_slice %101 {offsets = [0, 1, 0], sizes = [2, 1, 8], strides = [1, 1, 1]} : vector<2x8x8xf32> to vector<2x1x8xf32>
    %123 = vector.broadcast %116 : vector<2x1x1xf32> to vector<2x1x8xf32>
    %124 = arith.mulf %122, %123 : vector<2x1x8xf32>
    %125 = vector.broadcast %121 : vector<2x8x1xf32> to vector<2x8x8xf32>
    %126 = vector.broadcast %124 : vector<2x1x8xf32> to vector<2x8x8xf32>
    %127 = arith.mulf %125, %126 : vector<2x8x8xf32>
    %128 = arith.subf %101, %127 : vector<2x8x8xf32>
    %129 = vector.extract_strided_slice %108 {offsets = [0, 1, 0], sizes = [2, 1, 8], strides = [1, 1, 1]} : vector<2x8x8xf32> to vector<2x1x8xf32>
    %130 = vector.broadcast %116 : vector<2x1x1xf32> to vector<2x1x8xf32>
    %131 = arith.mulf %129, %130 : vector<2x1x8xf32>
    %132 = vector.broadcast %121 : vector<2x8x1xf32> to vector<2x8x8xf32>
    %133 = vector.broadcast %131 : vector<2x1x8xf32> to vector<2x8x8xf32>
    %134 = arith.mulf %132, %133 : vector<2x8x8xf32>
    %135 = arith.subf %108, %134 : vector<2x8x8xf32>
    %136 = vector.extract_strided_slice %113 {offsets = [0, 1, 0], sizes = [2, 1, 1], strides = [1, 1, 1]} : vector<2x8x1xf32> to vector<2x1x1xf32>
    %137 = arith.mulf %136, %116 : vector<2x1x1xf32>
    %138 = vector.broadcast %137 : vector<2x1x1xf32> to vector<2x8x1xf32>
    %139 = arith.mulf %121, %138 : vector<2x8x1xf32>
    %140 = arith.subf %113, %139 : vector<2x8x1xf32>
    %141 = vector.extract_strided_slice %128 {offsets = [0, 2, 2], sizes = [2, 1, 1], strides = [1, 1, 1]} : vector<2x8x8xf32> to vector<2x1x1xf32>
    %cst_33 = arith.constant 1.000000e+00 : f32
    %142 = vector.broadcast %cst_33 : f32 to vector<2x1x1xf32>
    %143 = arith.divf %142, %141 : vector<2x1x1xf32>
    %144 = vector.extract_strided_slice %128 {offsets = [0, 0, 2], sizes = [2, 8, 1], strides = [1, 1, 1]} : vector<2x8x8xf32> to vector<2x8x1xf32>
    %145 = vector.extract_strided_slice %17 {offsets = [0, 2], sizes = [8, 1], strides = [1, 1]} : vector<8x8xf32> to vector<8x1xf32>
    %146 = vector.shape_cast %145 : vector<8x1xf32> to vector<1x8x1xf32>
    %147 = vector.broadcast %146 : vector<1x8x1xf32> to vector<2x8x1xf32>
    %148 = arith.subf %144, %147 : vector<2x8x1xf32>
    %149 = vector.extract_strided_slice %128 {offsets = [0, 2, 0], sizes = [2, 1, 8], strides = [1, 1, 1]} : vector<2x8x8xf32> to vector<2x1x8xf32>
    %150 = vector.broadcast %143 : vector<2x1x1xf32> to vector<2x1x8xf32>
    %151 = arith.mulf %149, %150 : vector<2x1x8xf32>
    %152 = vector.broadcast %148 : vector<2x8x1xf32> to vector<2x8x8xf32>
    %153 = vector.broadcast %151 : vector<2x1x8xf32> to vector<2x8x8xf32>
    %154 = arith.mulf %152, %153 : vector<2x8x8xf32>
    %155 = arith.subf %128, %154 : vector<2x8x8xf32>
    %156 = vector.extract_strided_slice %135 {offsets = [0, 2, 0], sizes = [2, 1, 8], strides = [1, 1, 1]} : vector<2x8x8xf32> to vector<2x1x8xf32>
    %157 = vector.broadcast %143 : vector<2x1x1xf32> to vector<2x1x8xf32>
    %158 = arith.mulf %156, %157 : vector<2x1x8xf32>
    %159 = vector.broadcast %148 : vector<2x8x1xf32> to vector<2x8x8xf32>
    %160 = vector.broadcast %158 : vector<2x1x8xf32> to vector<2x8x8xf32>
    %161 = arith.mulf %159, %160 : vector<2x8x8xf32>
    %162 = arith.subf %135, %161 : vector<2x8x8xf32>
    %163 = vector.extract_strided_slice %140 {offsets = [0, 2, 0], sizes = [2, 1, 1], strides = [1, 1, 1]} : vector<2x8x1xf32> to vector<2x1x1xf32>
    %164 = arith.mulf %163, %143 : vector<2x1x1xf32>
    %165 = vector.broadcast %164 : vector<2x1x1xf32> to vector<2x8x1xf32>
    %166 = arith.mulf %148, %165 : vector<2x8x1xf32>
    %167 = arith.subf %140, %166 : vector<2x8x1xf32>
    %168 = vector.extract_strided_slice %155 {offsets = [0, 3, 3], sizes = [2, 1, 1], strides = [1, 1, 1]} : vector<2x8x8xf32> to vector<2x1x1xf32>
    %cst_34 = arith.constant 1.000000e+00 : f32
    %169 = vector.broadcast %cst_34 : f32 to vector<2x1x1xf32>
    %170 = arith.divf %169, %168 : vector<2x1x1xf32>
    %171 = vector.extract_strided_slice %155 {offsets = [0, 0, 3], sizes = [2, 8, 1], strides = [1, 1, 1]} : vector<2x8x8xf32> to vector<2x8x1xf32>
    %172 = vector.extract_strided_slice %17 {offsets = [0, 3], sizes = [8, 1], strides = [1, 1]} : vector<8x8xf32> to vector<8x1xf32>
    %173 = vector.shape_cast %172 : vector<8x1xf32> to vector<1x8x1xf32>
    %174 = vector.broadcast %173 : vector<1x8x1xf32> to vector<2x8x1xf32>
    %175 = arith.subf %171, %174 : vector<2x8x1xf32>
    %176 = vector.extract_strided_slice %155 {offsets = [0, 3, 0], sizes = [2, 1, 8], strides = [1, 1, 1]} : vector<2x8x8xf32> to vector<2x1x8xf32>
    %177 = vector.broadcast %170 : vector<2x1x1xf32> to vector<2x1x8xf32>
    %178 = arith.mulf %176, %177 : vector<2x1x8xf32>
    %179 = vector.broadcast %175 : vector<2x8x1xf32> to vector<2x8x8xf32>
    %180 = vector.broadcast %178 : vector<2x1x8xf32> to vector<2x8x8xf32>
    %181 = arith.mulf %179, %180 : vector<2x8x8xf32>
    %182 = arith.subf %155, %181 : vector<2x8x8xf32>
    %183 = vector.extract_strided_slice %162 {offsets = [0, 3, 0], sizes = [2, 1, 8], strides = [1, 1, 1]} : vector<2x8x8xf32> to vector<2x1x8xf32>
    %184 = vector.broadcast %170 : vector<2x1x1xf32> to vector<2x1x8xf32>
    %185 = arith.mulf %183, %184 : vector<2x1x8xf32>
    %186 = vector.broadcast %175 : vector<2x8x1xf32> to vector<2x8x8xf32>
    %187 = vector.broadcast %185 : vector<2x1x8xf32> to vector<2x8x8xf32>
    %188 = arith.mulf %186, %187 : vector<2x8x8xf32>
    %189 = arith.subf %162, %188 : vector<2x8x8xf32>
    %190 = vector.extract_strided_slice %167 {offsets = [0, 3, 0], sizes = [2, 1, 1], strides = [1, 1, 1]} : vector<2x8x1xf32> to vector<2x1x1xf32>
    %191 = arith.mulf %190, %170 : vector<2x1x1xf32>
    %192 = vector.broadcast %191 : vector<2x1x1xf32> to vector<2x8x1xf32>
    %193 = arith.mulf %175, %192 : vector<2x8x1xf32>
    %194 = arith.subf %167, %193 : vector<2x8x1xf32>
    %195 = vector.extract_strided_slice %182 {offsets = [0, 4, 4], sizes = [2, 1, 1], strides = [1, 1, 1]} : vector<2x8x8xf32> to vector<2x1x1xf32>
    %cst_35 = arith.constant 1.000000e+00 : f32
    %196 = vector.broadcast %cst_35 : f32 to vector<2x1x1xf32>
    %197 = arith.divf %196, %195 : vector<2x1x1xf32>
    %198 = vector.extract_strided_slice %182 {offsets = [0, 0, 4], sizes = [2, 8, 1], strides = [1, 1, 1]} : vector<2x8x8xf32> to vector<2x8x1xf32>
    %199 = vector.extract_strided_slice %17 {offsets = [0, 4], sizes = [8, 1], strides = [1, 1]} : vector<8x8xf32> to vector<8x1xf32>
    %200 = vector.shape_cast %199 : vector<8x1xf32> to vector<1x8x1xf32>
    %201 = vector.broadcast %200 : vector<1x8x1xf32> to vector<2x8x1xf32>
    %202 = arith.subf %198, %201 : vector<2x8x1xf32>
    %203 = vector.extract_strided_slice %182 {offsets = [0, 4, 0], sizes = [2, 1, 8], strides = [1, 1, 1]} : vector<2x8x8xf32> to vector<2x1x8xf32>
    %204 = vector.broadcast %197 : vector<2x1x1xf32> to vector<2x1x8xf32>
    %205 = arith.mulf %203, %204 : vector<2x1x8xf32>
    %206 = vector.broadcast %202 : vector<2x8x1xf32> to vector<2x8x8xf32>
    %207 = vector.broadcast %205 : vector<2x1x8xf32> to vector<2x8x8xf32>
    %208 = arith.mulf %206, %207 : vector<2x8x8xf32>
    %209 = arith.subf %182, %208 : vector<2x8x8xf32>
    %210 = vector.extract_strided_slice %189 {offsets = [0, 4, 0], sizes = [2, 1, 8], strides = [1, 1, 1]} : vector<2x8x8xf32> to vector<2x1x8xf32>
    %211 = vector.broadcast %197 : vector<2x1x1xf32> to vector<2x1x8xf32>
    %212 = arith.mulf %210, %211 : vector<2x1x8xf32>
    %213 = vector.broadcast %202 : vector<2x8x1xf32> to vector<2x8x8xf32>
    %214 = vector.broadcast %212 : vector<2x1x8xf32> to vector<2x8x8xf32>
    %215 = arith.mulf %213, %214 : vector<2x8x8xf32>
    %216 = arith.subf %189, %215 : vector<2x8x8xf32>
    %217 = vector.extract_strided_slice %194 {offsets = [0, 4, 0], sizes = [2, 1, 1], strides = [1, 1, 1]} : vector<2x8x1xf32> to vector<2x1x1xf32>
    %218 = arith.mulf %217, %197 : vector<2x1x1xf32>
    %219 = vector.broadcast %218 : vector<2x1x1xf32> to vector<2x8x1xf32>
    %220 = arith.mulf %202, %219 : vector<2x8x1xf32>
    %221 = arith.subf %194, %220 : vector<2x8x1xf32>
    %222 = vector.extract_strided_slice %209 {offsets = [0, 5, 5], sizes = [2, 1, 1], strides = [1, 1, 1]} : vector<2x8x8xf32> to vector<2x1x1xf32>
    %cst_36 = arith.constant 1.000000e+00 : f32
    %223 = vector.broadcast %cst_36 : f32 to vector<2x1x1xf32>
    %224 = arith.divf %223, %222 : vector<2x1x1xf32>
    %225 = vector.extract_strided_slice %209 {offsets = [0, 0, 5], sizes = [2, 8, 1], strides = [1, 1, 1]} : vector<2x8x8xf32> to vector<2x8x1xf32>
    %226 = vector.extract_strided_slice %17 {offsets = [0, 5], sizes = [8, 1], strides = [1, 1]} : vector<8x8xf32> to vector<8x1xf32>
    %227 = vector.shape_cast %226 : vector<8x1xf32> to vector<1x8x1xf32>
    %228 = vector.broadcast %227 : vector<1x8x1xf32> to vector<2x8x1xf32>
    %229 = arith.subf %225, %228 : vector<2x8x1xf32>
    %230 = vector.extract_strided_slice %209 {offsets = [0, 5, 0], sizes = [2, 1, 8], strides = [1, 1, 1]} : vector<2x8x8xf32> to vector<2x1x8xf32>
    %231 = vector.broadcast %224 : vector<2x1x1xf32> to vector<2x1x8xf32>
    %232 = arith.mulf %230, %231 : vector<2x1x8xf32>
    %233 = vector.broadcast %229 : vector<2x8x1xf32> to vector<2x8x8xf32>
    %234 = vector.broadcast %232 : vector<2x1x8xf32> to vector<2x8x8xf32>
    %235 = arith.mulf %233, %234 : vector<2x8x8xf32>
    %236 = arith.subf %209, %235 : vector<2x8x8xf32>
    %237 = vector.extract_strided_slice %216 {offsets = [0, 5, 0], sizes = [2, 1, 8], strides = [1, 1, 1]} : vector<2x8x8xf32> to vector<2x1x8xf32>
    %238 = vector.broadcast %224 : vector<2x1x1xf32> to vector<2x1x8xf32>
    %239 = arith.mulf %237, %238 : vector<2x1x8xf32>
    %240 = vector.broadcast %229 : vector<2x8x1xf32> to vector<2x8x8xf32>
    %241 = vector.broadcast %239 : vector<2x1x8xf32> to vector<2x8x8xf32>
    %242 = arith.mulf %240, %241 : vector<2x8x8xf32>
    %243 = arith.subf %216, %242 : vector<2x8x8xf32>
    %244 = vector.extract_strided_slice %221 {offsets = [0, 5, 0], sizes = [2, 1, 1], strides = [1, 1, 1]} : vector<2x8x1xf32> to vector<2x1x1xf32>
    %245 = arith.mulf %244, %224 : vector<2x1x1xf32>
    %246 = vector.broadcast %245 : vector<2x1x1xf32> to vector<2x8x1xf32>
    %247 = arith.mulf %229, %246 : vector<2x8x1xf32>
    %248 = arith.subf %221, %247 : vector<2x8x1xf32>
    %249 = vector.extract_strided_slice %236 {offsets = [0, 6, 6], sizes = [2, 1, 1], strides = [1, 1, 1]} : vector<2x8x8xf32> to vector<2x1x1xf32>
    %cst_37 = arith.constant 1.000000e+00 : f32
    %250 = vector.broadcast %cst_37 : f32 to vector<2x1x1xf32>
    %251 = arith.divf %250, %249 : vector<2x1x1xf32>
    %252 = vector.extract_strided_slice %236 {offsets = [0, 0, 6], sizes = [2, 8, 1], strides = [1, 1, 1]} : vector<2x8x8xf32> to vector<2x8x1xf32>
    %253 = vector.extract_strided_slice %17 {offsets = [0, 6], sizes = [8, 1], strides = [1, 1]} : vector<8x8xf32> to vector<8x1xf32>
    %254 = vector.shape_cast %253 : vector<8x1xf32> to vector<1x8x1xf32>
    %255 = vector.broadcast %254 : vector<1x8x1xf32> to vector<2x8x1xf32>
    %256 = arith.subf %252, %255 : vector<2x8x1xf32>
    %257 = vector.extract_strided_slice %236 {offsets = [0, 6, 0], sizes = [2, 1, 8], strides = [1, 1, 1]} : vector<2x8x8xf32> to vector<2x1x8xf32>
    %258 = vector.broadcast %251 : vector<2x1x1xf32> to vector<2x1x8xf32>
    %259 = arith.mulf %257, %258 : vector<2x1x8xf32>
    %260 = vector.broadcast %256 : vector<2x8x1xf32> to vector<2x8x8xf32>
    %261 = vector.broadcast %259 : vector<2x1x8xf32> to vector<2x8x8xf32>
    %262 = arith.mulf %260, %261 : vector<2x8x8xf32>
    %263 = arith.subf %236, %262 : vector<2x8x8xf32>
    %264 = vector.extract_strided_slice %243 {offsets = [0, 6, 0], sizes = [2, 1, 8], strides = [1, 1, 1]} : vector<2x8x8xf32> to vector<2x1x8xf32>
    %265 = vector.broadcast %251 : vector<2x1x1xf32> to vector<2x1x8xf32>
    %266 = arith.mulf %264, %265 : vector<2x1x8xf32>
    %267 = vector.broadcast %256 : vector<2x8x1xf32> to vector<2x8x8xf32>
    %268 = vector.broadcast %266 : vector<2x1x8xf32> to vector<2x8x8xf32>
    %269 = arith.mulf %267, %268 : vector<2x8x8xf32>
    %270 = arith.subf %243, %269 : vector<2x8x8xf32>
    %271 = vector.extract_strided_slice %248 {offsets = [0, 6, 0], sizes = [2, 1, 1], strides = [1, 1, 1]} : vector<2x8x1xf32> to vector<2x1x1xf32>
    %272 = arith.mulf %271, %251 : vector<2x1x1xf32>
    %273 = vector.broadcast %272 : vector<2x1x1xf32> to vector<2x8x1xf32>
    %274 = arith.mulf %256, %273 : vector<2x8x1xf32>
    %275 = arith.subf %248, %274 : vector<2x8x1xf32>
    %276 = vector.extract_strided_slice %263 {offsets = [0, 7, 7], sizes = [2, 1, 1], strides = [1, 1, 1]} : vector<2x8x8xf32> to vector<2x1x1xf32>
    %cst_38 = arith.constant 1.000000e+00 : f32
    %277 = vector.broadcast %cst_38 : f32 to vector<2x1x1xf32>
    %278 = arith.divf %277, %276 : vector<2x1x1xf32>
    %279 = vector.extract_strided_slice %263 {offsets = [0, 0, 7], sizes = [2, 8, 1], strides = [1, 1, 1]} : vector<2x8x8xf32> to vector<2x8x1xf32>
    %280 = vector.extract_strided_slice %17 {offsets = [0, 7], sizes = [8, 1], strides = [1, 1]} : vector<8x8xf32> to vector<8x1xf32>
    %281 = vector.shape_cast %280 : vector<8x1xf32> to vector<1x8x1xf32>
    %282 = vector.broadcast %281 : vector<1x8x1xf32> to vector<2x8x1xf32>
    %283 = arith.subf %279, %282 : vector<2x8x1xf32>
    %284 = vector.extract_strided_slice %270 {offsets = [0, 7, 0], sizes = [2, 1, 8], strides = [1, 1, 1]} : vector<2x8x8xf32> to vector<2x1x8xf32>
    %285 = vector.broadcast %278 : vector<2x1x1xf32> to vector<2x1x8xf32>
    %286 = arith.mulf %284, %285 : vector<2x1x8xf32>
    %287 = vector.broadcast %283 : vector<2x8x1xf32> to vector<2x8x8xf32>
    %288 = vector.broadcast %286 : vector<2x1x8xf32> to vector<2x8x8xf32>
    %289 = arith.mulf %287, %288 : vector<2x8x8xf32>
    %290 = arith.subf %270, %289 : vector<2x8x8xf32>
    %291 = vector.extract_strided_slice %275 {offsets = [0, 7, 0], sizes = [2, 1, 1], strides = [1, 1, 1]} : vector<2x8x1xf32> to vector<2x1x1xf32>
    %292 = arith.mulf %291, %278 : vector<2x1x1xf32>
    %293 = vector.broadcast %292 : vector<2x1x1xf32> to vector<2x8x1xf32>
    %294 = arith.mulf %283, %293 : vector<2x8x1xf32>
    %295 = arith.subf %275, %294 : vector<2x8x1xf32>
    %296 = vector.broadcast %295 : vector<2x8x1xf32> to vector<2x8x8xf32>
    %297 = arith.mulf %86, %296 : vector<2x8x8xf32>
    %cst_39 = arith.constant dense<0.000000e+00> : vector<2x8xf32>
    %298 = vector.multi_reduction <add>, %297, %cst_39 [1] : vector<2x8x8xf32> to vector<2x8xf32>
    %299 = vector.shape_cast %298 : vector<2x8xf32> to vector<2x1x8xf32>
    %300 = arith.mulf %86, %290 : vector<2x8x8xf32>
    %cst_40 = arith.constant dense<0.000000e+00> : vector<2x8xf32>
    %301 = vector.multi_reduction <add>, %300, %cst_40 [1] : vector<2x8x8xf32> to vector<2x8xf32>
    %302 = vector.shape_cast %301 : vector<2x8xf32> to vector<2x1x8xf32>
    %303 = vector.broadcast %3 : f32 to vector<2x1x8xf32>
    %304 = arith.mulf %303, %11 : vector<2x1x8xf32>
    %305 = arith.mulf %304, %11 : vector<2x1x8xf32>
    %306 = vector.broadcast %4 : f32 to vector<2x1x8xf32>
    %307 = arith.addf %305, %306 : vector<2x1x8xf32>
    %308 = arith.subf %307, %302 : vector<2x1x8xf32>
    %cst_41 = arith.constant 0.000000e+00 : f32
    %309 = vector.broadcast %cst_41 : f32 to vector<2x1x8xf32>
    %310 = arith.maximumf %308, %309 : vector<2x1x8xf32>
    %311 = tpu.concatenate %299, %310 in 2 : vector<2x1x8xf32>, vector<2x1x8xf32> -> vector<2x1x16xf32>
    %c0_42 = arith.constant 0 : index
    %c0_43 = arith.constant 0 : index
    %c0_44 = arith.constant 0 : index
    %312 = vector.load %arg7[%c0_42, %c0_43, %c0_44] : memref<2x1x16xf32, #tpu.memory_space<vmem>>, vector<2x1x16xf32>
    tpu.vector_store %arg7[%c0_42, %c0_43, %c0_44], %311 {strides = array<i32>} : memref<2x1x16xf32, #tpu.memory_space<vmem>>, vector<2x1x16xf32>,
    return
  }
}

</mosaic_0001>

<bundles_post_ra>
// kernel: gpr_forward.1
= control target key start
LH: loop header
LB: loop body
LE: loop exit
PB: predicated region body
PF: predicated region fallthrough
CT: control target
= control target key end

     0   :  { %12 = vsyncpa [#allocation3], 0  ;;  %s1887_s0 = inlined_call_operand.vmem [shape: f32[3], index: 0, kind: input, shape index: {}]   ;;  %s1888_s1 = inlined_call_operand.vmem [shape: f32[2,8,4], index: 1, kind: input, shape index: {}]   ;;  %s1889_s2 = inlined_call_operand.vmem [shape: f32[2,8,4], index: 2, kind: input, shape index: {}]   ;;  %s1890_s3 = inlined_call_operand.vmem [shape: f32[2,8,1], index: 3, kind: input, shape index: {}]   ;;  %s1891_s4 = inlined_call_operand.vmem [shape: f32[2,1,8], index: 4, kind: input, shape index: {}]   ;;  %s1892_s5 = inlined_call_operand.vmem [shape: f32[2,1,8], index: 5, kind: input, shape index: {}]   ;;  %s1893_s6 = inlined_call_operand.vmem [shape: f32[2,8,1], index: 6, kind: input, shape index: {}]   ;;  %s1894_s7 = inlined_call_operand.vmem [shape: f32[2,1,16], index: 7, kind: output, shape index: {}]  }
   0x1   :  { %s19_s26 = sshll.u32 %s1887_s0, 4  ;;  %s20_s26 = int_to_ptr.vmem [resolvable:$true] %s19_s26 }
   0x2   :  { %s1572_s27 = scalar_lea.vmem %s20_s26, 16  ;;  %p1577_p1 = scmp.lt.s32.totalorder %s20_s26, %s20_s26 }
   0x3   :  { %p1573_p0 = scmp.ne.s32.totalorder %s20_s26, %s1572_s27  ;;  %p1578_p2 = scmp.lt.s32.totalorder %s1572_s27, %s1572_s27 }
   0x5   :  { %p1579_p3 = por %p1578_p2, %p1577_p1 }
   0x7   :  { %p1580_p4 = pnand %p1579_p3, %p1573_p0 }
   0x9   :  { %1583 = shalt.err (!%p1580_p4)
}
   0xa   :  { %s1586_s28 = smov [#allocation2]  }
   0xb   :  { %22 = dma.vmem_to_smem %s20_s26, 16, %s1586_s28, [#allocation3]  }
   0xc   :  { %1584 = dma.done.wait [#allocation3], 16  }
   0xd   :  { %1585 = vsyncadd [#allocation3], 4294967280 }
   0xe   :  { %38 = sfence }
   0xf   :  { %v49_v0 = vld [vmem:[%s1888_s1] sm:$0xff]  ;;  %vm68_vm0 = vcmask 31744   ;;  %v50_v1 = vld [vmem:[%s1888_s1 + $0x8] sm:$0xff]  ;;  %v1587_v2 = vmov 0.0   ;;  %vm1588_vm1 = vmmov 0   ;;  %s39_s13 = sld [smem:[#allocation2]]  ;;  %v61_v10 = vlaneseq }
  0x10   :  { %1447 = vmatprep.subr.mxu0 %v1587_v2  ;;  %1452 = vmatprep.subr.mxu1 %v1587_v2  ;;  %v51_v3 = vld [vmem:[%s1889_s2] sm:$0xff]  ;;  %v52_v4 = vld [vmem:[%s1889_s2 + $0x8] sm:$0xff]  ;;  %v1589_v6 = vmov 0   ;;  %vm503_vm3 = vcmask 64512   ;;  %s1706_s18 = sld [smem:[#allocation2 + $0x2]]  ;;  %s1418_s19 = sld [smem:[#allocation2 + $0x1]] }
  0x11   :  { %1448 = vmatpush3.xpose.msk.msra.mxu0 %vm68_vm0, %v49_v0  ;;  %1453 = vmatpush3.xpose.msk.msra.mxu1 %vm68_vm0, %v50_v1  ;;  %v53_v5 = vld [vmem:[%s1890_s3] sm:$0xff]  ;;  %v54_v7 = vld [vmem:[%s1890_s3 + $0x8] sm:$0xff]  ;;  %v1693_v11 = vshrl.u32 %v61_v10, 7  ;;  %v64_v12 = vand.u32 127, %v61_v10  ;;  %s1593_s9 = smov 1   ;;  %s1596_s10 = smov 2  }
  0x12   :  { %1449 = vmatprep.mubr.msk.f32.mxu0 %vm1588_vm1, %v1587_v2  ;;  %1454 = vmatprep.mubr.msk.f32.mxu1 %vm1588_vm1, %v1587_v2  ;;  %s1597_s11 = smov 125   ;;  %s1599_s1 = smov 3   ;;  %vm1410_vm12 = vcmask 122880  }
  0x13   :  { %1457 = vmatprep.subr.mxu0 %v1587_v2  ;;  %1462 = vmatprep.subr.mxu1 %v1587_v2  ;;  %vm65_vm2 = vcmp.eq.s32.totalorder %v1693_v11, %v64_v12  ;;  %s1600_s2 = smov 124   ;;  %s1602_s12 = smov 4  }
  0x14   :  { %1450 = vmatmul.mubr.msk.f32.vlgmr.msra.gmra.mrb[0].mxu0 %vm68_vm0, %v49_v0  ;;  %1455 = vmatmul.mubr.msk.f32.vlgmr.msra.gmra.mrb[0].mxu1 %vm68_vm0, %v50_v1  ;;  %v1696_v13 = vsel %vm65_vm2, 1.0, %v1587_v2  ;;  %s1605_s14 = smov 5   ;;  %s1606_s15 = smov 122  }
  0x15   :  { %1458 = vmatpush3.xpose.msk.msra.mxu0 %vm68_vm0, %v51_v3  ;;  %1459 = vmatprep.mubr.msk.f32.mxu0 %vm1588_vm1, %v1587_v2  ;;  %s44_s16 = smul.f32 %s39_s13, %s39_s13  ;;  %s1603_s13 = smov 123  }
  0x16   :  { %1467 = vmatprep.subr.mxu0 %v1587_v2  ;;  %1463 = vmatpush3.xpose.msk.msra.mxu1 %vm68_vm0, %v52_v4  ;;  %s43_s22 = smul.f32 %s1706_s18, %s1706_s18  ;;  %s1611_s18 = smov 8  }
  0x17   :  { %1464 = vmatprep.mubr.msk.f32.mxu1 %vm1588_vm1, %v1587_v2  ;;  %1472 = vmatprep.subr.mxu1 %v1587_v2  ;;  %v45_v8 = vstv %s44_s16  ;;  %s42_s25 = smul.f32 %s1418_s19, %s1418_s19  ;;  %s1607_s16 = smov 6  }
  0x18   :  { %1460 = vmatmul.mubr.msk.f32.vlgmr.msra.gmra.mrb[2].mxu0 %vm68_vm0, %v49_v0  ;;  %1505 = vset.pattern.permute.xlu1 %v1589_v6  ;;  %1522 = vrcp.f32 %v45_v8 }
  0x19   :  { %1468 = vmatpush3.xpose.msk.msra.mxu0 %vm68_vm0, %v51_v3  ;;  %1469 = vmatprep.mubr.msk.f32.mxu0 %vm1588_vm1, %v1587_v2 }
  0x1a   :  { %1465 = vmatmul.mubr.msk.f32.vlgmr.msra.gmra.mrb[2].mxu1 %vm68_vm0, %v50_v1  ;;  %1506 = vset.pattern.permute.xlu0 %v1589_v6 }
  0x1b   :  { %1473 = vmatpush3.xpose.msk.msra.mxu1 %vm68_vm0, %v52_v4  ;;  %1474 = vmatprep.mubr.msk.f32.mxu1 %vm1588_vm1, %v1587_v2 }
  0x1c   :  { %1470 = vmatmul.mubr.msk.f32.vlgmr.msra.gmra.mrb[4].mxu0 %vm68_vm0, %v51_v3  ;;  %606 = vperm.xlu1 %1505, %v53_v5  }
  0x1e   :  { %1475 = vmatmul.mubr.msk.f32.vlgmr.msra.gmra.mrb[4].mxu1 %vm68_vm0, %v52_v4 }
  0x20   :  { %611 = vperm.xlu1 %1505, %v54_v7  }
  0x22   :  { %v1523_v9 = vpop.eup %1522 }
  0x23   :  { %1477 = vpush %v1523_v9 }
  0x54   :  { %s1478_s3 = spop %1477 }
  0x55   :  { %s48_s17 = smul.f32 0.5, %s1478_s3  ;;  %s1609_s3 = smov 121  }
  0xe7   :  { %v138_v14 = vpop.f32.mrb[0].mxu0  ;;  %v211_v15 = vpop.f32.mrb[0].mxu1 }
  0xe8   :  { %v501_v16 = vmul.f32 %v1696_v13, %v138_v14  ;;  %v1451_v17 = vpop.f32.mrb[1].mxu0  ;;  %v1456_v18 = vpop.f32.mrb[1].mxu1  ;;  %v502_v19 = vmul.f32 %v1696_v13, %v211_v15  ;;  %v540_v58 = vmul.f32 2.0, %v138_v14  ;;  %v541_v2 = vmul.f32 2.0, %v211_v15 }
  0xea   :  { %v504_v20 = vsel %vm503_vm3, %v501_v16, 0.0  ;;  %v507_v24 = vsel %vm503_vm3, %v502_v19, 0.0 }
  0xeb   :  { %505 = vadd.xlane.f32.xlu0 %v504_v20  ;;  %v284_v21 = vpop.f32.mrb[2].mxu0  ;;  %v510_v35 = vrot.slane %v504_v20, 4  ;;  %v516_v39 = vrot.slane %v507_v24, 4 }
  0xec   :  { %v1461_v22 = vpop.f32.mrb[3].mxu0  ;;  %v548_v54 = vmul.f32 2.0, %v284_v21 }
  0xed   :  { %v357_v23 = vpop.f32.mrb[2].mxu1  ;;  %v511_v38 = vadd.f32 %v510_v35, %v504_v20  ;;  %v517_v43 = vadd.f32 %v516_v39, %v507_v24 }
  0xee   :  { %v1466_v25 = vpop.f32.mrb[3].mxu1  ;;  %v549_v62 = vmul.f32 2.0, %v357_v23 }
  0xef   :  { %508 = vadd.xlane.f32.xlu0 %v507_v24  ;;  %v427_v26 = vpop.f32.mrb[4].mxu0  ;;  %v512_v42 = vrot.slane %v511_v38, 2  ;;  %v518_v46 = vrot.slane %v517_v43, 2  ;;  %v570_v24 = vstv %s48_s17  ;;  %s1610_s17 = smov 7  }
  0xf0   :  { %v1471_v27 = vpop.f32.mrb[5].mxu0  ;;  %v522_v30 = vmul.f32 %v1696_v13, %v427_v26 }
  0xf1   :  { %v497_v28 = vpop.f32.mrb[4].mxu1  ;;  %v513_v47 = vadd.f32 %v512_v42, %v511_v38  ;;  %v519_v51 = vadd.f32 %v518_v46, %v517_v43 }
  0xf2   :  { %v1476_v29 = vpop.f32.mrb[5].mxu1  ;;  %v524_v31 = vsel %vm503_vm3, %v522_v30, 0.0  ;;  %v523_v32 = vmul.f32 %v1696_v13, %v497_v28 }
  0xf3   :  { %v525_v33 = vrot.slane %v524_v31, 4  ;;  %v514_v50 = vrot.slane %v513_v47, 1  ;;  %v520_v56 = vrot.slane %v519_v51, 1 }
  0xf4   :  { %v531_v34 = vsel %vm503_vm3, %v523_v32, 0.0 }
  0xf5   :  { %v526_v36 = vadd.f32 %v525_v33, %v524_v31  ;;  %v532_v37 = vrot.slane %v531_v34, 4  ;;  %v515_v55 = vadd.f32 %v514_v50, %v513_v47  ;;  %v521_v1 = vadd.f32 %v520_v56, %v519_v51  ;;  %v1433_v47 = vld [vmem:[%s1891_s4] ss:$0 sm:$0xff] }
  0xf6   :  { %v1721_v50 = vld [vmem:[%s1892_s5] sm:$0x1] }
  0xf7   :  { %v527_v40 = vrot.slane %v526_v36, 2  ;;  %v533_v41 = vadd.f32 %v532_v37, %v531_v34 }
  0xf9   :  { %v528_v44 = vadd.f32 %v527_v40, %v526_v36  ;;  %v534_v45 = vrot.slane %v533_v41, 2 }
  0xfb   :  { %v535_v48 = vadd.f32 %v534_v45, %v533_v41  ;;  %v529_v49 = vrot.slane %v528_v44, 1 }
  0xfd   :  { %v530_v52 = vadd.f32 %v529_v49, %v528_v44  ;;  %v536_v53 = vrot.slane %v535_v48, 1  ;;  %v607_v49 = vpop.permute.xlu1 %606 }
  0xfe   :  { %v626_v51 = vmul.f32 %v1433_v47, %v607_v49  ;;  %v754_v47 = vsub.s32 1, %v1693_v11 }
  0xff   :  { %v537_v61 = vadd.f32 %v536_v53, %v535_v48  ;;  %v1714_v48 = vsub.s32 0, %v1693_v11  ;;  %v1725_v53 = vstv %s43_s22 }
 0x101   :  { %v1732_v56 = vpop.permute.xlu1 %611 }
 0x178   :  { %v506_v57 = vpop.xlane.xlu0 %505 }
 0x179   :  { %v538_v59 = vadd.f32 %v515_v55, %v506_v57  ;;  %v546_v60 = vadd.f32 %v530_v52, %v506_v57  ;;  %v645_v52 = vrot.slane %v1721_v50, %v1714_v48  ;;  %v1434_v55 = vld [vmem:[%s1891_s4 + $0x1] ss:$0 sm:$0xff]  ;;  %v629_v57 = vmul.f32 %v1696_v13, %v1725_v53 }
 0x17b   :  { %v542_v63 = vsub.f32 %v538_v59, %v540_v58  ;;  %v550_v0 = vsub.f32 %v546_v60, %v548_v54  ;;  %v1727_v54 = vstv %s42_s25  ;;  %v634_v58 = vsub.f32 1.0, %v626_v51 }
 0x17c   :  { %v509_v3 = vpop.xlane.xlu0 %508  ;;  %v652_v60 = vmul.f32 %v645_v52, %v607_v49 }
 0x17d   :  { %v544_v4 = vmax.f32 %v542_v63, 0.0  ;;  %v552_v5 = vmax.f32 %v550_v0, 0.0  ;;  %v539_v7 = vadd.f32 %v521_v1, %v509_v3  ;;  %v547_v8 = vadd.f32 %v537_v61, %v509_v3 }
 0x17e   :  { %v627_v63 = vmul.f32 %v1434_v55, %v1732_v56 }
 0x17f   :  { %1524 = vrsqrt.f32 %v544_v4  ;;  %v543_v9 = vsub.f32 %v539_v7, %v541_v2  ;;  %v551_v10 = vsub.f32 %v547_v8, %v549_v62  ;;  %vm556_vm4 = vcmp.eq.f32.partialorder %v544_v4, inf }
 0x180   :  { %1526 = vrsqrt.f32 %v552_v5  ;;  %v559_v15 = vand.u32 2147483648, %v544_v4  ;;  %vm558_vm5 = vcmp.eq.f32.partialorder %v544_v4, 0.0  ;;  %vm582_vm6 = vcmp.eq.f32.partialorder %v552_v5, inf }
 0x181   :  { %v545_v12 = vmax.f32 %v543_v9, 0.0  ;;  %v553_v16 = vmax.f32 %v551_v10, 0.0  ;;  %v585_v21 = vand.u32 2147483648, %v552_v5  ;;  %vm584_vm7 = vcmp.eq.f32.partialorder %v552_v5, 0.0 }
 0x182   :  { %v636_v2 = vmul.f32 %v1696_v13, %v634_v58  ;;  %v635_v8 = vsub.f32 1.0, %v627_v63 }
 0x183   :  { %1528 = vrsqrt.f32 %v545_v12  ;;  %vm563_vm8 = vcmp.eq.f32.partialorder %v545_v12, inf  ;;  %vm565_vm9 = vcmp.eq.f32.partialorder %v545_v12, 0.0  ;;  %v566_v30 = vand.u32 2147483648, %v545_v12 }
 0x184   :  { %1530 = vrsqrt.f32 %v553_v16  ;;  %vm589_vm10 = vcmp.eq.f32.partialorder %v553_v16, inf  ;;  %v592_v35 = vand.u32 2147483648, %v553_v16  ;;  %vm591_vm11 = vcmp.eq.f32.partialorder %v553_v16, 0.0 }
 0x189   :  { %v1525_v14 = vpop.eup %1524 }
 0x18a   :  { %v1527_v17 = vpop.eup %1526  ;;  %v555_v18 = vmul.f32 %v1525_v14, %v544_v4 }
 0x18b   :  { %v581_v19 = vmul.f32 %v1527_v17, %v552_v5 }
 0x18c   :  { %v557_v20 = vsel %vm556_vm4, %v544_v4, %v555_v18  ;;  %v59_v18 = vld [vmem:[%s1893_s6] sm:$0xff] }
 0x18d   :  { %v1529_v22 = vpop.eup %1528  ;;  %v560_v23 = vsel %vm558_vm5, %v559_v15, %v557_v20  ;;  %v583_v25 = vsel %vm582_vm6, %v552_v5, %v581_v19  ;;  %v60_v20 = vld [vmem:[%s1893_s6 + $0x8] sm:$0xff]  ;;  %s1591_s6 = smov 127  }
 0x18e   :  { %v1531_v26 = vpop.eup %1530  ;;  %v562_v27 = vmul.f32 %v1529_v22, %v545_v12  ;;  %v568_v28 = vsub.f32 0.0, %v560_v23  ;;  %v586_v29 = vsel %vm584_vm7, %v585_v21, %v583_v25 }
 0x18f   :  { %v588_v31 = vmul.f32 %v1531_v26, %v553_v16  ;;  %v594_v32 = vsub.f32 0.0, %v586_v29 }
 0x190   :  { %v564_v33 = vsel %vm563_vm8, %v545_v12, %v562_v27  ;;  %v571_v34 = vmul.f32 %v570_v24, %v568_v28  ;;  %v1590_v28 = vmov 1  }
 0x191   :  { %v567_v36 = vsel %vm565_vm9, %v566_v30, %v564_v33  ;;  %v590_v37 = vsel %vm589_vm10, %v553_v16, %v588_v31  ;;  %v596_v38 = vmul.f32 %v594_v32, %v570_v24  ;;  %v637_v16 = vmul.f32 %v1696_v13, %v635_v8 }
 0x192   :  { %v569_v39 = vsub.f32 0.0, %v567_v36  ;;  %v573_v40 = vmul.f32 1.442695, %v571_v34  ;;  %v593_v41 = vsel %vm591_vm11, %v592_v35, %v590_v37 }
 0x193   :  { %v595_v42 = vsub.f32 0.0, %v593_v41  ;;  %v598_v43 = vmul.f32 1.442695, %v596_v38 }
 0x194   :  { %v572_v44 = vmul.f32 %v570_v24, %v569_v39  ;;  %1532 = vpow2.f32 %v573_v40 }
 0x195   :  { %v1708_v45 = vmul.f32 %v595_v42, %v570_v24  ;;  %1534 = vpow2.f32 %v598_v43 }
 0x196   :  { %v575_v46 = vmul.f32 1.442695, %v572_v44 }
 0x198   :  { %1536 = vpow2.f32 %v575_v46  ;;  %v600_v46 = vmul.f32 1.442695, %v1708_v45 }
 0x19e   :  { %v1533_v59 = vpop.eup %1532 }
 0x19f   :  { %v1535_v61 = vpop.eup %1534  ;;  %v578_v62 = vmul.f32 %v1533_v59, %v1727_v54 }
 0x1a0   :  { %v602_v0 = vmul.f32 %v1535_v61, %v1727_v54 }
 0x1a1   :  { %v630_v1 = vadd.f32 %v629_v57, %v578_v62 }
 0x1a2   :  { %v1537_v3 = vpop.eup %1536  ;;  %v1740_v4 = vmul.f32 %v652_v60, %v602_v0  ;;  %v1778_v60 = vld [vmem:[%s1892_s5 + $0x1] sm:$0x1]  ;;  %s1594_s5 = smov 126  }
 0x1a3   :  { %v632_v5 = vmul.f32 %v630_v1, %v626_v51  ;;  %v579_v7 = vmul.f32 %v1537_v3, %v1727_v54  ;;  %v1592_v51 = vmov 2  }
 0x1a5   :  { %v638_v9 = vadd.f32 %v636_v2, %v632_v5  ;;  %v631_v10 = vadd.f32 %v629_v57, %v579_v7 }
 0x1a7   :  { %1538 = vrcp.f32 %v638_v9  ;;  %v633_v12 = vmul.f32 %v631_v10, %v627_v63  ;;  %v660_v14 = vsub.f32 %v638_v9, %v1696_v13  ;;  %v649_v63 = vrot.slane %v1778_v60, %v1714_v48 }
 0x1a9   :  { %v639_v17 = vadd.f32 %v637_v16, %v633_v12  ;;  %676 = vperm.xlu1 %1505, %v660_v14   ;;  %v653_v1 = vmul.f32 %v649_v63, %v1732_v56 }
 0x1ab   :  { %1540 = vrcp.f32 %v639_v17  ;;  %v661_v25 = vsub.f32 %v639_v17, %v1696_v13 }
 0x1b1   :  { %v1539_v15 = vpop.eup %1538 }
 0x1b2   :  { %664 = vperm.xlu0 %1506, %v1539_v15   ;;  %v710_v19 = vmul.f32 %v1539_v15, %v59_v18 }
 0x1b4   :  { %v715_v21 = vrot.slane %v710_v19, %v1714_v48 }
 0x1b5   :  { %v1541_v22 = vpop.eup %1540 }
 0x1b6   :  { %669 = vperm.xlu1 %1505, %v1541_v22   ;;  %v720_v23 = vmul.f32 %v715_v21, %v660_v14  ;;  %v711_v24 = vmul.f32 %v1541_v22, %v60_v20  ;;  %1508 = vset.pattern.permute.xlu0 %v1592_v51 }
 0x1b8   :  { %v719_v26 = vrot.slane %v711_v24, %v1714_v48  ;;  %v1770_v49 = vsub.f32 %v59_v18, %v720_v23 }
 0x1ba   :  { %681 = vperm.xlu1 %1505, %v661_v25   ;;  %v721_v27 = vmul.f32 %v719_v26, %v661_v25 }
 0x1bc   :  { %v1773_v58 = vsub.f32 %v60_v20, %v721_v27 }
 0x1be   :  { %1507 = vset.pattern.permute.xlu1 %v1590_v28 }
 0x228   :  { %v677_v29 = vpop.permute.xlu1 %676 }
 0x231   :  { %v665_v30 = vpop.permute.xlu0 %664 }
 0x232   :  { %v672_v31 = vmul.f32 %v665_v30, %v638_v9  ;;  %v696_v2 = vmul.f32 %v665_v30, %v1740_v4 }
 0x234   :  { %v687_v32 = vrot.slane %v672_v31, %v1714_v48  ;;  %v701_v5 = vrot.slane %v696_v2, %v1714_v48 }
 0x235   :  { %v670_v33 = vpop.permute.xlu1 %669 }
 0x236   :  { %v692_v34 = vmul.f32 %v687_v32, %v677_v29  ;;  %v673_v35 = vmul.f32 %v670_v33, %v639_v17 }
 0x238   :  { %v1755_v36 = vsub.f32 %v638_v9, %v692_v34  ;;  %v691_v37 = vrot.slane %v673_v35, %v1714_v48  ;;  %v706_v9 = vmul.f32 %v701_v5, %v677_v29 }
 0x239   :  { %v682_v38 = vpop.permute.xlu1 %681 }
 0x23a   :  { %1542 = vrcp.f32 %v1755_v36  ;;  %v693_v39 = vmul.f32 %v691_v37, %v682_v38  ;;  %v728_v43 = vsub.f32 %v1755_v36, %v1696_v13  ;;  %v708_v16 = vsub.f32 %v1740_v4, %v706_v9 }
 0x23c   :  { %v1759_v40 = vsub.f32 %v639_v17, %v693_v39 }
 0x23e   :  { %1544 = vrcp.f32 %v1759_v40  ;;  %v729_v44 = vsub.f32 %v1759_v40, %v1696_v13 }
 0x23f   :  { %1546 = vpow2.f32 %v600_v46  ;;  %v1595_v46 = vmov 3  }
 0x244   :  { %v1543_v41 = vpop.eup %1542 }
 0x245   :  { %778 = vrot.lane.b32.xlu1 %v1543_v41, %s1591_s6 }
 0x248   :  { %v1545_v42 = vpop.eup %1544 }
 0x249   :  { %780 = vrot.lane.b32.xlu1 %v1545_v42, %s1591_s6  ;;  %v1547_v61 = vpop.eup %1546 }
 0x24a   :  { %v603_v0 = vmul.f32 %v1547_v61, %v1727_v54 }
 0x24c   :  { %v1786_v3 = vmul.f32 %v653_v1, %v603_v0 }
 0x24d   :  { %744 = vperm.xlu1 %1507, %v728_v43  }
 0x24e   :  { %v697_v7 = vmul.f32 %v670_v33, %v1786_v3 }
 0x250   :  { %v705_v8 = vrot.slane %v697_v7, %v1714_v48 }
 0x251   :  { %732 = vperm.xlu1 %1507, %v1543_v41  }
 0x252   :  { %v707_v12 = vmul.f32 %v705_v8, %v682_v38 }
 0x254   :  { %v709_v56 = vsub.f32 %v1786_v3, %v707_v12 }
 0x255   :  { %737 = vperm.xlu1 %1507, %v1545_v42  }
 0x259   :  { %749 = vperm.xlu1 %1507, %v729_v44  }
 0x25d   :  { %1509 = vset.pattern.permute.xlu1 %v1592_v51 }
 0x2b7   :  { %v779_v52 = vpop.permute.xlu1 %778 }
 0x2b8   :  { %v784_v55 = vmul.f32 %v779_v52, %v1770_v49 }
 0x2ba   :  { %v789_v57 = vrot.slane %v784_v55, %v754_v47 }
 0x2bb   :  { %v781_v59 = vpop.permute.xlu1 %780 }
 0x2bc   :  { %v785_v45 = vmul.f32 %v781_v59, %v1773_v58  ;;  %796 = vrot.lane.b32.xlu1 %v789_v57, %s1593_s9 }
 0x2be   :  { %v793_v62 = vrot.slane %v785_v45, %v754_v47 }
 0x2c0   :  { %798 = vrot.lane.b32.xlu1 %v793_v62, %s1593_s9 }
 0x2cc   :  { %v745_v10 = vpop.permute.xlu1 %744 }
 0x2d0   :  { %v733_v14 = vpop.permute.xlu1 %732 }
 0x2d1   :  { %v764_v17 = vmul.f32 %v733_v14, %v708_v16  ;;  %v740_v26 = vmul.f32 %v733_v14, %v1755_v36 }
 0x2d3   :  { %v769_v18 = vrot.slane %v764_v17, %v754_v47  ;;  %v755_v27 = vrot.slane %v740_v26, %v754_v47 }
 0x2d4   :  { %v738_v15 = vpop.permute.xlu1 %737 }
 0x2d5   :  { %v765_v19 = vmul.f32 %v738_v15, %v709_v56  ;;  %v774_v20 = vmul.f32 %v769_v18, %v745_v10  ;;  %v741_v28 = vmul.f32 %v738_v15, %v1759_v40  ;;  %v760_v29 = vmul.f32 %v755_v27, %v745_v10 }
 0x2d7   :  { %v773_v21 = vrot.slane %v765_v19, %v754_v47  ;;  %v776_v22 = vsub.f32 %v708_v16, %v774_v20  ;;  %v759_v30 = vrot.slane %v741_v28, %v754_v47  ;;  %v762_v31 = vsub.f32 %v1755_v36, %v760_v29 }
 0x2d8   :  { %v750_v23 = vpop.permute.xlu1 %749 }
 0x2d9   :  { %v775_v24 = vmul.f32 %v773_v21, %v750_v23  ;;  %v761_v32 = vmul.f32 %v759_v30, %v750_v23  ;;  %1548 = vrcp.f32 %v762_v31  ;;  %v934_v30 = vsub.s32 3, %v1693_v11 }
 0x2db   :  { %v777_v25 = vsub.f32 %v709_v56, %v775_v24  ;;  %v763_v33 = vsub.f32 %v1759_v40, %v761_v32  ;;  %v818_v40 = vsub.f32 %v762_v31, %v1696_v13 }
 0x2dd   :  { %1550 = vrcp.f32 %v763_v33  ;;  %v819_v36 = vsub.f32 %v763_v33, %v1696_v13 }
 0x2e3   :  { %v1549_v39 = vpop.eup %1548 }
 0x2e7   :  { %v1551_v41 = vpop.eup %1550 }
 0x32e   :  { %v797_v34 = vpop.permute.xlu1 %796 }
 0x32f   :  { %v802_v35 = vmul.f32 %v797_v34, %v728_v43 }
 0x331   :  { %806 = vrot.lane.b32.xlu0 %v802_v35, %s1591_s6 }
 0x332   :  { %v799_v37 = vpop.permute.xlu1 %798 }
 0x333   :  { %v803_v38 = vmul.f32 %v799_v37, %v729_v44  ;;  %v844_v44 = vsub.s32 2, %v1693_v11 }
 0x335   :  { %868 = vrot.lane.b32.xlu0 %v1549_v39, %s1594_s5  ;;  %808 = vrot.lane.b32.xlu1 %v803_v38, %s1591_s6 }
 0x339   :  { %822 = vperm.xlu0 %1508, %v1549_v39   ;;  %870 = vrot.lane.b32.xlu1 %v1551_v41, %s1594_s5 }
 0x33d   :  { %839 = vperm.xlu0 %1508, %v819_v36   ;;  %827 = vperm.xlu1 %1509, %v1551_v41  }
 0x341   :  { %834 = vperm.xlu1 %1509, %v818_v40   ;;  %1511 = vset.pattern.permute.xlu0 %v1595_v46 }
 0x345   :  { %1510 = vset.pattern.permute.xlu1 %v1595_v46 }
 0x3a3   :  { %v807_v42 = vpop.permute.xlu0 %806 }
 0x3a4   :  { %v812_v43 = vsub.f32 %v1770_v49, %v807_v42 }
 0x3a7   :  { %v869_v47 = vpop.permute.xlu0 %868  ;;  %v809_v51 = vpop.permute.xlu1 %808 }
 0x3a8   :  { %v874_v52 = vmul.f32 %v869_v47, %v812_v43  ;;  %v813_v57 = vsub.f32 %v1773_v58, %v809_v51 }
 0x3aa   :  { %v879_v55 = vrot.slane %v874_v52, %v844_v44 }
 0x3ab   :  { %v871_v59 = vpop.permute.xlu1 %870 }
 0x3ac   :  { %v875_v45 = vmul.f32 %v871_v59, %v813_v57  ;;  %886 = vrot.lane.b32.xlu1 %v879_v55, %s1596_s10 }
 0x3ae   :  { %v883_v61 = vrot.slane %v875_v45, %v844_v44 }
 0x3b0   :  { %888 = vrot.lane.b32.xlu0 %v883_v61, %s1596_s10 }
 0x3b8   :  { %v823_v62 = vpop.permute.xlu0 %822 }
 0x3b9   :  { %v854_v63 = vmul.f32 %v823_v62, %v776_v22  ;;  %v830_v16 = vmul.f32 %v823_v62, %v762_v31 }
 0x3bb   :  { %v859_v49 = vrot.slane %v854_v63, %v844_v44  ;;  %v845_v14 = vrot.slane %v830_v16, %v844_v44 }
 0x3bc   :  { %v828_v0 = vpop.permute.xlu1 %827  ;;  %v840_v5 = vpop.permute.xlu0 %839 }
 0x3bd   :  { %v855_v1 = vmul.f32 %v828_v0, %v777_v25  ;;  %v831_v58 = vmul.f32 %v828_v0, %v763_v33 }
 0x3bf   :  { %v863_v2 = vrot.slane %v855_v1, %v844_v44  ;;  %v849_v17 = vrot.slane %v831_v58, %v844_v44 }
 0x3c0   :  { %v835_v7 = vpop.permute.xlu1 %834 }
 0x3c1   :  { %v864_v8 = vmul.f32 %v859_v49, %v835_v7  ;;  %v865_v9 = vmul.f32 %v863_v2, %v840_v5  ;;  %v850_v18 = vmul.f32 %v845_v14, %v835_v7  ;;  %v851_v56 = vmul.f32 %v849_v17, %v840_v5 }
 0x3c3   :  { %v866_v10 = vsub.f32 %v776_v22, %v864_v8  ;;  %v867_v12 = vsub.f32 %v777_v25, %v865_v9  ;;  %v852_v15 = vsub.f32 %v762_v31, %v850_v18  ;;  %v853_v19 = vsub.f32 %v763_v33, %v851_v56 }
 0x3c4   :  { %v1598_v31 = vmov 4   ;;  %v1024_v18 = vsub.s32 4, %v1693_v11  ;;  %v1601_v56 = vmov 5  }
 0x3c5   :  { %1552 = vrcp.f32 %v852_v15  ;;  %v908_v25 = vsub.f32 %v852_v15, %v1696_v13  ;;  %v909_v27 = vsub.f32 %v853_v19, %v1696_v13 }
 0x3c6   :  { %1554 = vrcp.f32 %v853_v19 }
 0x3cf   :  { %v1553_v26 = vpop.eup %1552 }
 0x3d0   :  { %v1555_v22 = vpop.eup %1554 }
 0x41e   :  { %v887_v20 = vpop.permute.xlu1 %886 }
 0x41f   :  { %v892_v21 = vmul.f32 %v887_v20, %v818_v40 }
 0x421   :  { %896 = vrot.lane.b32.xlu1 %v892_v21, %s1594_s5 }
 0x422   :  { %v889_v23 = vpop.permute.xlu0 %888 }
 0x423   :  { %v893_v24 = vmul.f32 %v889_v23, %v819_v36 }
 0x425   :  { %898 = vrot.lane.b32.xlu0 %v893_v24, %s1594_s5  ;;  %958 = vrot.lane.b32.xlu1 %v1553_v26, %s1597_s11 }
 0x429   :  { %960 = vrot.lane.b32.xlu0 %v1555_v22, %s1597_s11  ;;  %912 = vperm.xlu1 %1510, %v1553_v26  }
 0x42d   :  { %917 = vperm.xlu0 %1511, %v1555_v22   ;;  %924 = vperm.xlu1 %1510, %v908_v25  }
 0x431   :  { %929 = vperm.xlu1 %1510, %v909_v27   ;;  %1512 = vset.pattern.permute.xlu0 %v1598_v31 }
 0x435   :  { %1513 = vset.pattern.permute.xlu1 %v1598_v31 }
 0x493   :  { %v897_v28 = vpop.permute.xlu1 %896 }
 0x494   :  { %v902_v29 = vsub.f32 %v812_v43, %v897_v28 }
 0x497   :  { %v899_v32 = vpop.permute.xlu0 %898  ;;  %v959_v33 = vpop.permute.xlu1 %958 }
 0x498   :  { %v964_v34 = vmul.f32 %v959_v33, %v902_v29  ;;  %v903_v35 = vsub.f32 %v813_v57, %v899_v32 }
 0x49a   :  { %v969_v37 = vrot.slane %v964_v34, %v934_v30 }
 0x49b   :  { %v961_v38 = vpop.permute.xlu0 %960 }
 0x49c   :  { %v965_v39 = vmul.f32 %v961_v38, %v903_v35  ;;  %976 = vrot.lane.b32.xlu0 %v969_v37, %s1599_s1 }
 0x49e   :  { %v973_v41 = vrot.slane %v965_v39, %v934_v30 }
 0x4a0   :  { %978 = vrot.lane.b32.xlu1 %v973_v41, %s1599_s1 }
 0x4a8   :  { %v913_v36 = vpop.permute.xlu1 %912 }
 0x4a9   :  { %v944_v40 = vmul.f32 %v913_v36, %v866_v10  ;;  %v920_v57 = vmul.f32 %v913_v36, %v852_v15 }
 0x4ab   :  { %v949_v42 = vrot.slane %v944_v40, %v934_v30  ;;  %v935_v62 = vrot.slane %v920_v57, %v934_v30 }
 0x4ac   :  { %v918_v43 = vpop.permute.xlu0 %917  ;;  %v925_v44 = vpop.permute.xlu1 %924 }
 0x4ad   :  { %v945_v46 = vmul.f32 %v918_v43, %v867_v12  ;;  %v954_v47 = vmul.f32 %v949_v42, %v925_v44  ;;  %v921_v61 = vmul.f32 %v918_v43, %v853_v19  ;;  %v940_v63 = vmul.f32 %v935_v62, %v925_v44 }
 0x4af   :  { %v953_v51 = vrot.slane %v945_v46, %v934_v30  ;;  %v956_v52 = vsub.f32 %v866_v10, %v954_v47  ;;  %v939_v49 = vrot.slane %v921_v61, %v934_v30  ;;  %v942_v0 = vsub.f32 %v852_v15, %v940_v63 }
 0x4b0   :  { %v930_v55 = vpop.permute.xlu1 %929 }
 0x4b1   :  { %v955_v59 = vmul.f32 %v953_v51, %v930_v55  ;;  %v941_v1 = vmul.f32 %v939_v49, %v930_v55  ;;  %1556 = vrcp.f32 %v942_v0  ;;  %v998_v58 = vsub.f32 %v942_v0, %v1696_v13 }
 0x4b2   :  { %v1114_v49 = vsub.s32 5, %v1693_v11 }
 0x4b3   :  { %v957_v45 = vsub.f32 %v867_v12, %v955_v59  ;;  %v943_v2 = vsub.f32 %v853_v19, %v941_v1 }
 0x4b5   :  { %1558 = vrcp.f32 %v943_v2  ;;  %v999_v16 = vsub.f32 %v943_v2, %v1696_v13 }
 0x4bb   :  { %v1557_v10 = vpop.eup %1556 }
 0x4bf   :  { %v1559_v12 = vpop.eup %1558 }
 0x50e   :  { %v977_v5 = vpop.permute.xlu0 %976 }
 0x50f   :  { %v982_v7 = vmul.f32 %v977_v5, %v908_v25 }
 0x511   :  { %986 = vrot.lane.b32.xlu0 %v982_v7, %s1597_s11 }
 0x512   :  { %v979_v8 = vpop.permute.xlu1 %978 }
 0x513   :  { %v983_v9 = vmul.f32 %v979_v8, %v909_v27 }
 0x515   :  { %1048 = vrot.lane.b32.xlu0 %v1557_v10, %s1600_s2  ;;  %988 = vrot.lane.b32.xlu1 %v983_v9, %s1597_s11 }
 0x519   :  { %1002 = vperm.xlu0 %1512, %v1557_v10   ;;  %1050 = vrot.lane.b32.xlu1 %v1559_v12, %s1600_s2 }
 0x51d   :  { %1019 = vperm.xlu0 %1512, %v999_v16   ;;  %1007 = vperm.xlu1 %1513, %v1559_v12  }
 0x521   :  { %1014 = vperm.xlu1 %1513, %v998_v58   ;;  %1515 = vset.pattern.permute.xlu0 %v1601_v56 }
 0x525   :  { %1514 = vset.pattern.permute.xlu1 %v1601_v56 }
 0x583   :  { %v987_v14 = vpop.permute.xlu0 %986 }
 0x584   :  { %v992_v17 = vsub.f32 %v902_v29, %v987_v14 }
 0x587   :  { %v1049_v15 = vpop.permute.xlu0 %1048  ;;  %v989_v19 = vpop.permute.xlu1 %988 }
 0x588   :  { %v1054_v20 = vmul.f32 %v1049_v15, %v992_v17  ;;  %v993_v23 = vsub.f32 %v903_v35, %v989_v19 }
 0x58a   :  { %v1059_v21 = vrot.slane %v1054_v20, %v1024_v18 }
 0x58b   :  { %v1051_v24 = vpop.permute.xlu1 %1050 }
 0x58c   :  { %v1055_v26 = vmul.f32 %v1051_v24, %v993_v23  ;;  %1066 = vrot.lane.b32.xlu1 %v1059_v21, %s1602_s12 }
 0x58e   :  { %v1063_v22 = vrot.slane %v1055_v26, %v1024_v18 }
 0x590   :  { %1068 = vrot.lane.b32.xlu0 %v1063_v22, %s1602_s12 }
 0x598   :  { %v1003_v25 = vpop.permute.xlu0 %1002 }
 0x599   :  { %v1034_v27 = vmul.f32 %v1003_v25, %v956_v52  ;;  %v1010_v41 = vmul.f32 %v1003_v25, %v942_v0 }
 0x59b   :  { %v1039_v28 = vrot.slane %v1034_v27, %v1024_v18  ;;  %v1025_v36 = vrot.slane %v1010_v41, %v1024_v18 }
 0x59c   :  { %v1008_v29 = vpop.permute.xlu1 %1007  ;;  %v1020_v32 = vpop.permute.xlu0 %1019 }
 0x59d   :  { %v1035_v30 = vmul.f32 %v1008_v29, %v957_v45  ;;  %v1011_v35 = vmul.f32 %v1008_v29, %v943_v2 }
 0x59f   :  { %v1043_v31 = vrot.slane %v1035_v30, %v1024_v18  ;;  %v1029_v40 = vrot.slane %v1011_v35, %v1024_v18 }
 0x5a0   :  { %v1015_v33 = vpop.permute.xlu1 %1014 }
 0x5a1   :  { %v1044_v34 = vmul.f32 %v1039_v28, %v1015_v33  ;;  %v1045_v37 = vmul.f32 %v1043_v31, %v1020_v32  ;;  %v1030_v42 = vmul.f32 %v1025_v36, %v1015_v33  ;;  %v1031_v43 = vmul.f32 %v1029_v40, %v1020_v32 }
 0x5a3   :  { %v1046_v38 = vsub.f32 %v956_v52, %v1044_v34  ;;  %v1047_v39 = vsub.f32 %v957_v45, %v1045_v37  ;;  %v1032_v44 = vsub.f32 %v942_v0, %v1030_v42  ;;  %v1033_v46 = vsub.f32 %v943_v2, %v1031_v43 }
 0x5a4   :  { %v1604_v0 = vmov 6   ;;  %v1204_v42 = vsub.s32 6, %v1693_v11 }
 0x5a5   :  { %1560 = vrcp.f32 %v1032_v44  ;;  %v1088_v45 = vsub.f32 %v1032_v44, %v1696_v13  ;;  %v1089_v61 = vsub.f32 %v1033_v46, %v1696_v13 }
 0x5a6   :  { %1562 = vrcp.f32 %v1033_v46 }
 0x5af   :  { %v1561_v57 = vpop.eup %1560 }
 0x5b0   :  { %v1563_v52 = vpop.eup %1562 }
 0x5fe   :  { %v1067_v47 = vpop.permute.xlu1 %1066 }
 0x5ff   :  { %v1072_v51 = vmul.f32 %v1067_v47, %v998_v58 }
 0x601   :  { %1076 = vrot.lane.b32.xlu1 %v1072_v51, %s1600_s2 }
 0x602   :  { %v1069_v55 = vpop.permute.xlu0 %1068 }
 0x603   :  { %v1073_v59 = vmul.f32 %v1069_v55, %v999_v16 }
 0x605   :  { %1078 = vrot.lane.b32.xlu0 %v1073_v59, %s1600_s2  ;;  %1138 = vrot.lane.b32.xlu1 %v1561_v57, %s1603_s13 }
 0x609   :  { %1140 = vrot.lane.b32.xlu0 %v1563_v52, %s1603_s13  ;;  %1092 = vperm.xlu1 %1514, %v1561_v57  }
 0x60d   :  { %1097 = vperm.xlu0 %1515, %v1563_v52   ;;  %1104 = vperm.xlu1 %1514, %v1088_v45  }
 0x611   :  { %1109 = vperm.xlu1 %1514, %v1089_v61   ;;  %1516 = vset.pattern.permute.xlu0 %v1604_v0 }
 0x615   :  { %1517 = vset.pattern.permute.xlu1 %v1604_v0 }
 0x673   :  { %v1077_v62 = vpop.permute.xlu1 %1076 }
 0x674   :  { %v1082_v63 = vsub.f32 %v992_v17, %v1077_v62 }
 0x677   :  { %v1079_v1 = vpop.permute.xlu0 %1078  ;;  %v1139_v2 = vpop.permute.xlu1 %1138 }
 0x678   :  { %v1144_v5 = vmul.f32 %v1139_v2, %v1082_v63  ;;  %v1083_v7 = vsub.f32 %v993_v23, %v1079_v1 }
 0x67a   :  { %v1149_v8 = vrot.slane %v1144_v5, %v1114_v49 }
 0x67b   :  { %v1141_v9 = vpop.permute.xlu0 %1140 }
 0x67c   :  { %v1145_v10 = vmul.f32 %v1141_v9, %v1083_v7  ;;  %1156 = vrot.lane.b32.xlu0 %v1149_v8, %s1605_s14 }
 0x67e   :  { %v1153_v12 = vrot.slane %v1145_v10, %v1114_v49 }
 0x680   :  { %1158 = vrot.lane.b32.xlu1 %v1153_v12, %s1605_s14 }
 0x688   :  { %v1093_v16 = vpop.permute.xlu1 %1092 }
 0x689   :  { %v1124_v58 = vmul.f32 %v1093_v16, %v1046_v38  ;;  %v1100_v23 = vmul.f32 %v1093_v16, %v1032_v44 }
 0x68b   :  { %v1129_v14 = vrot.slane %v1124_v58, %v1114_v49  ;;  %v1115_v25 = vrot.slane %v1100_v23, %v1114_v49 }
 0x68c   :  { %v1098_v17 = vpop.permute.xlu0 %1097  ;;  %v1105_v18 = vpop.permute.xlu1 %1104 }
 0x68d   :  { %v1125_v56 = vmul.f32 %v1098_v17, %v1047_v39  ;;  %v1134_v15 = vmul.f32 %v1129_v14, %v1105_v18  ;;  %v1101_v22 = vmul.f32 %v1098_v17, %v1033_v46  ;;  %v1120_v27 = vmul.f32 %v1115_v25, %v1105_v18 }
 0x68e   :  { %v1294_v25 = vsub.s32 7, %v1693_v11 }
 0x68f   :  { %v1133_v19 = vrot.slane %v1125_v56, %v1114_v49  ;;  %v1136_v20 = vsub.f32 %v1046_v38, %v1134_v15  ;;  %v1119_v28 = vrot.slane %v1101_v22, %v1114_v49  ;;  %v1122_v29 = vsub.f32 %v1032_v44, %v1120_v27 }
 0x690   :  { %v1110_v21 = vpop.permute.xlu1 %1109 }
 0x691   :  { %v1135_v24 = vmul.f32 %v1133_v19, %v1110_v21  ;;  %v1121_v30 = vmul.f32 %v1119_v28, %v1110_v21  ;;  %1564 = vrcp.f32 %v1122_v29  ;;  %v1178_v35 = vsub.f32 %v1122_v29, %v1696_v13 }
 0x692   :  { %v1608_v19 = vmov 7  }
 0x693   :  { %v1137_v26 = vsub.f32 %v1047_v39, %v1135_v24  ;;  %v1123_v31 = vsub.f32 %v1033_v46, %v1121_v30 }
 0x695   :  { %1566 = vrcp.f32 %v1123_v31  ;;  %v1179_v41 = vsub.f32 %v1123_v31, %v1696_v13 }
 0x69b   :  { %v1565_v38 = vpop.eup %1564 }
 0x69f   :  { %v1567_v39 = vpop.eup %1566 }
 0x6ee   :  { %v1157_v32 = vpop.permute.xlu0 %1156 }
 0x6ef   :  { %v1162_v33 = vmul.f32 %v1157_v32, %v1088_v45 }
 0x6f1   :  { %1166 = vrot.lane.b32.xlu0 %v1162_v33, %s1603_s13 }
 0x6f2   :  { %v1159_v34 = vpop.permute.xlu1 %1158 }
 0x6f3   :  { %v1163_v37 = vmul.f32 %v1159_v34, %v1089_v61 }
 0x6f5   :  { %1228 = vrot.lane.b32.xlu0 %v1565_v38, %s1606_s15  ;;  %1168 = vrot.lane.b32.xlu1 %v1163_v37, %s1603_s13 }
 0x6f9   :  { %1182 = vperm.xlu0 %1516, %v1565_v38   ;;  %1230 = vrot.lane.b32.xlu1 %v1567_v39, %s1606_s15 }
 0x6fd   :  { %1199 = vperm.xlu0 %1516, %v1179_v41   ;;  %1187 = vperm.xlu1 %1517, %v1567_v39  }
 0x701   :  { %1194 = vperm.xlu1 %1517, %v1178_v35   ;;  %1519 = vset.pattern.permute.xlu0 %v1608_v19 }
 0x705   :  { %1518 = vset.pattern.permute.xlu1 %v1608_v19 }
 0x763   :  { %v1167_v36 = vpop.permute.xlu0 %1166 }
 0x764   :  { %v1172_v40 = vsub.f32 %v1082_v63, %v1167_v36 }
 0x767   :  { %v1229_v43 = vpop.permute.xlu0 %1228  ;;  %v1169_v44 = vpop.permute.xlu1 %1168 }
 0x768   :  { %v1234_v46 = vmul.f32 %v1229_v43, %v1172_v40  ;;  %v1173_v51 = vsub.f32 %v1083_v7, %v1169_v44 }
 0x76a   :  { %v1239_v47 = vrot.slane %v1234_v46, %v1204_v42 }
 0x76b   :  { %v1231_v55 = vpop.permute.xlu1 %1230 }
 0x76c   :  { %v1235_v59 = vmul.f32 %v1231_v55, %v1173_v51  ;;  %1246 = vrot.lane.b32.xlu1 %v1239_v47, %s1607_s16 }
 0x76e   :  { %v1243_v57 = vrot.slane %v1235_v59, %v1204_v42 }
 0x770   :  { %1248 = vrot.lane.b32.xlu0 %v1243_v57, %s1607_s16 }
 0x778   :  { %v1183_v52 = vpop.permute.xlu0 %1182 }
 0x779   :  { %v1214_v45 = vmul.f32 %v1183_v52, %v1136_v20  ;;  %v1190_v7 = vmul.f32 %v1183_v52, %v1122_v29 }
 0x77b   :  { %v1219_v61 = vrot.slane %v1214_v45, %v1204_v42  ;;  %v1205_v12 = vrot.slane %v1190_v7, %v1204_v42  ;;  %v1382_v45 = vmul.f32 %v1727_v54, %v1721_v50 }
 0x77c   :  { %v1188_v62 = vpop.permute.xlu1 %1187  ;;  %v1200_v63 = vpop.permute.xlu0 %1199 }
 0x77d   :  { %v1215_v49 = vmul.f32 %v1188_v62, %v1137_v26  ;;  %v1191_v10 = vmul.f32 %v1188_v62, %v1123_v31 }
 0x77f   :  { %v1223_v0 = vrot.slane %v1215_v49, %v1204_v42  ;;  %v1209_v16 = vrot.slane %v1191_v10, %v1204_v42 }
 0x780   :  { %v1195_v1 = vpop.permute.xlu1 %1194 }
 0x781   :  { %v1224_v2 = vmul.f32 %v1219_v61, %v1195_v1  ;;  %v1225_v5 = vmul.f32 %v1223_v0, %v1200_v63  ;;  %v1210_v58 = vmul.f32 %v1205_v12, %v1195_v1  ;;  %v1211_v14 = vmul.f32 %v1209_v16, %v1200_v63 }
 0x782   :  { %v1384_v63 = vmul.f32 %v1382_v45, %v1721_v50  ;;  %v1383_v1 = vmul.f32 %v1727_v54, %v1778_v60 }
 0x783   :  { %v1834_v8 = vsub.f32 %v1136_v20, %v1224_v2  ;;  %v1836_v9 = vsub.f32 %v1137_v26, %v1225_v5  ;;  %v1212_v17 = vsub.f32 %v1122_v29, %v1210_v58  ;;  %v1213_v18 = vsub.f32 %v1123_v31, %v1211_v14 }
 0x784   :  { %v1386_v16 = vadd.f32 %v1384_v63, %v1725_v53 }
 0x785   :  { %1568 = vrcp.f32 %v1212_v17  ;;  %v1268_v37 = vsub.f32 %v1212_v17, %v1696_v13  ;;  %v1269_v11 = vsub.f32 %v1213_v18, %v1696_v13 }
 0x786   :  { %1570 = vrcp.f32 %v1213_v18 }
 0x78f   :  { %v1569_v24 = vpop.eup %1568 }
 0x790   :  { %v1571_v26 = vpop.eup %1570 }
 0x7de   :  { %v1247_v56 = vpop.permute.xlu1 %1246 }
 0x7df   :  { %v1252_v15 = vmul.f32 %v1247_v56, %v1178_v35 }
 0x7e1   :  { %1256 = vrot.lane.b32.xlu1 %v1252_v15, %s1606_s15 }
 0x7e2   :  { %v1249_v20 = vpop.permute.xlu0 %1248 }
 0x7e3   :  { %v1253_v21 = vmul.f32 %v1249_v20, %v1179_v41 }
 0x7e5   :  { %1258 = vrot.lane.b32.xlu0 %v1253_v21, %s1606_s15  ;;  %1304 = vrot.lane.b32.xlu1 %v1569_v24, %s1609_s3 }
 0x7e9   :  { %1306 = vrot.lane.b32.xlu0 %v1571_v26, %s1609_s3 }
 0x853   :  { %v1257_v23 = vpop.permute.xlu1 %1256 }
 0x854   :  { %v1842_v22 = vsub.f32 %v1172_v40, %v1257_v23 }
 0x857   :  { %v1259_v27 = vpop.permute.xlu0 %1258  ;;  %v1305_v28 = vpop.permute.xlu1 %1304 }
 0x858   :  { %v1310_v29 = vmul.f32 %v1305_v28, %v1842_v22  ;;  %v1846_v30 = vsub.f32 %v1173_v51, %v1259_v27 }
 0x85a   :  { %v1315_v31 = vrot.slane %v1310_v29, %v1294_v25 }
 0x85b   :  { %v1307_v32 = vpop.permute.xlu0 %1306 }
 0x85c   :  { %v1311_v33 = vmul.f32 %v1307_v32, %v1846_v30  ;;  %1322 = vrot.lane.b32.xlu1 %v1315_v31, %s1610_s17 }
 0x85e   :  { %v1319_v34 = vrot.slane %v1311_v33, %v1294_v25 }
 0x860   :  { %1324 = vrot.lane.b32.xlu0 %v1319_v34, %s1610_s17  ;;  %1272 = vperm.xlu1 %1518, %v1569_v24  }
 0x864   :  { %1277 = vperm.xlu0 %1519, %v1571_v26   ;;  %1284 = vperm.xlu1 %1518, %v1268_v37  }
 0x868   :  { %1289 = vperm.xlu1 %1518, %v1269_v11   ;;  %1520 = vset.pattern.permute.xlu0 %v1589_v6 }
 0x86c   :  { %1521 = vset.pattern.permute.xlu1 %v1589_v6 }
 0x8ce   :  { %v1323_v38 = vpop.permute.xlu1 %1322 }
 0x8cf   :  { %v1328_v39 = vmul.f32 %v1323_v38, %v1268_v37 }
 0x8d1   :  { %1332 = vrot.lane.b32.xlu0 %v1328_v39, %s1609_s3 }
 0x8d2   :  { %v1325_v41 = vpop.permute.xlu0 %1324 }
 0x8d3   :  { %v1329_v35 = vmul.f32 %v1325_v41, %v1269_v11 }
 0x8d5   :  { %1334 = vrot.lane.b32.xlu1 %v1329_v35, %s1609_s3 }
 0x8df   :  { %v1273_v36 = vpop.permute.xlu1 %1272 }
 0x8e0   :  { %v1280_v40 = vmul.f32 %v1273_v36, %v1834_v8 }
 0x8e2   :  { %v1295_v42 = vrot.slane %v1280_v40, %v1294_v25 }
 0x8e3   :  { %v1278_v43 = vpop.permute.xlu0 %1277  ;;  %v1285_v44 = vpop.permute.xlu1 %1284 }
 0x8e4   :  { %v1281_v13 = vmul.f32 %v1278_v43, %v1836_v9  ;;  %v1300_v46 = vmul.f32 %v1295_v42, %v1285_v44 }
 0x8e6   :  { %v1302_v47 = vsub.f32 %v1834_v8, %v1300_v46  ;;  %v1299_v6 = vrot.slane %v1281_v13, %v1294_v25 }
 0x8e7   :  { %v1290_v51 = vpop.permute.xlu1 %1289 }
 0x8e8   :  { %v1366_v55 = vmul.f32 %v1302_v47, %v1740_v4  ;;  %v1301_v59 = vmul.f32 %v1299_v6, %v1290_v51 }
 0x8ea   :  { %v1368_v57 = vsel %vm503_vm3, %v1366_v55, 0.0  ;;  %v1303_v52 = vsub.f32 %v1836_v9, %v1301_v59  ;;  %v1385_v9 = vmul.f32 %v1383_v1, %v1778_v60 }
 0x8eb   :  { %v1369_v61 = vrot.slane %v1368_v57, 4 }
 0x8ec   :  { %v1367_v62 = vmul.f32 %v1303_v52, %v1786_v3  ;;  %v1387_v18 = vadd.f32 %v1385_v9, %v1725_v53 }
 0x8ed   :  { %v1370_v49 = vadd.f32 %v1369_v61, %v1368_v57 }
 0x8ee   :  { %v1375_v0 = vsel %vm503_vm3, %v1367_v62, 0.0 }
 0x8ef   :  { %v1371_v2 = vrot.slane %v1370_v49, 2  ;;  %v1376_v5 = vrot.slane %v1375_v0, 4 }
 0x8f1   :  { %v1372_v8 = vadd.f32 %v1371_v2, %v1370_v49  ;;  %v1377_v7 = vadd.f32 %v1376_v5, %v1375_v0 }
 0x8f3   :  { %v1378_v10 = vrot.slane %v1377_v7, 2  ;;  %v1373_v12 = vrot.slane %v1372_v8, 1 }
 0x8f5   :  { %v1379_v58 = vadd.f32 %v1378_v10, %v1377_v7  ;;  %v1374_v14 = vadd.f32 %v1373_v12, %v1372_v8 }
 0x8f7   :  { %v1380_v17 = vrot.slane %v1379_v58, 1  ;;  %v1388_v56 = vsub.f32 %v1386_v16, %v1374_v14 }
 0x8f9   :  { %v1381_v50 = vadd.f32 %v1380_v17, %v1379_v58  ;;  %v1390_v26 = vmax.f32 %v1388_v56, 0.0 }
 0x8fb   :  { %v1389_v15 = vsub.f32 %v1387_v18, %v1381_v50  ;;  %v1397_v23 = vrot.slane %v1390_v26, %v1714_v48 }
 0x8fd   :  { %v1391_v20 = vmax.f32 %v1389_v15, 0.0 }
 0x8ff   :  { %v1401_v24 = vrot.slane %v1391_v20, %v1714_v48 }
 0x943   :  { %v1333_v19 = vpop.permute.xlu0 %1332 }
 0x944   :  { %v1338_v54 = vsub.f32 %v1842_v22, %v1333_v19 }
 0x946   :  { %1342 = vperm.xlu0 %1520, %v1338_v54  }
 0x947   :  { %v1335_v21 = vpop.permute.xlu1 %1334 }
 0x948   :  { %v1339_v60 = vsub.f32 %v1846_v30, %v1335_v21 }
 0x94a   :  { %1404 = vrot.lane.b32.xlu0 %v1401_v24, %s1611_s18  ;;  %1347 = vperm.xlu1 %1521, %v1339_v60  }
 0x94e   :  { %1402 = vrot.lane.b32.xlu1 %v1397_v23, %s1611_s18 }
 0x9c5   :  { %v1343_v53 = vpop.permute.xlu0 %1342 }
 0x9c6   :  { %v1350_v25 = vmul.f32 %v1343_v53, %v1740_v4 }
 0x9c8   :  { %v1352_v27 = vsel %vm503_vm3, %v1350_v25, 0.0 }
 0x9c9   :  { %v1353_v22 = vrot.slane %v1352_v27, 4  ;;  %v1348_v28 = vpop.permute.xlu1 %1347  ;;  %v1405_v36 = vpop.permute.xlu0 %1404 }
 0x9ca   :  { %v1351_v29 = vmul.f32 %v1348_v28, %v1786_v3 }
 0x9cb   :  { %v1354_v31 = vadd.f32 %v1353_v22, %v1352_v27 }
 0x9cc   :  { %v1359_v30 = vsel %vm503_vm3, %v1351_v29, 0.0 }
 0x9cd   :  { %v1355_v32 = vrot.slane %v1354_v31, 2  ;;  %v1360_v33 = vrot.slane %v1359_v30, 4  ;;  %v1403_v41 = vpop.permute.xlu1 %1402 }
 0x9cf   :  { %v1356_v34 = vadd.f32 %v1355_v32, %v1354_v31  ;;  %v1361_v37 = vadd.f32 %v1360_v33, %v1359_v30 }
 0x9d1   :  { %v1357_v11 = vrot.slane %v1356_v34, 1  ;;  %v1362_v38 = vrot.slane %v1361_v37, 2 }
 0x9d3   :  { %v1363_v48 = vadd.f32 %v1362_v38, %v1361_v37  ;;  %v1358_v39 = vadd.f32 %v1357_v11, %v1356_v34 }
 0x9d5   :  { %v1364_v4 = vrot.slane %v1363_v48, 1  ;;  %v1408_v35 = vsel %vm503_vm3, %v1358_v39, %v1403_v41 }
 0x9d6   :  { %1411 = vst.msk [vmem:[%s1894_s7] sm:$0x1] %vm1410_vm12, %v1408_v35 }
 0x9d7   :  { %v1365_v3 = vadd.f32 %v1364_v4, %v1363_v48 }
 0x9d9   :  { %v1409_v40 = vsel %vm503_vm3, %v1365_v3, %v1405_v36 }
 0x9da   :  { %1412 = vst.msk [vmem:[%s1894_s7 + $0x1] sm:$0x1] %vm1410_vm12, %v1409_v40 }
 0x9db   :  { %1417 = vsyncpa [#allocation3], 1 }

</bundles_post_ra>
